<compile_context>
chip_gen: v6e
topology: v6e:2x2x1
jax: 0.10.0
libtpu: 0.0.40
codegen_flags: <defaults>
</compile_context>

<pallas_src>
import functools
import math

import jax
import jax.numpy as jnp
from jax.experimental import pallas as pl
from jax.experimental.pallas import tpu as pltpu


def _round_up(a: int, m: int) -> int:
    return ((a + m - 1) // m) * m


def mlp_kernel(x_ref, w1_ref, b1_ref, g_ref, beta_ref, w2_ref, b2_ref, o_ref,
               *, hidden: int):
    # fc1: [tm, in] @ [in, H_PAD] -> [tm, H_PAD], f32 accumulation on the MXU.
    x = x_ref[...]
    h = jnp.dot(x, w1_ref[...], preferred_element_type=jnp.float32) + b1_ref[...]
    h_pad = h.shape[-1]

    # LayerNorm over the TRUE hidden width (eps matches torch default 1e-5).
    # Padded lanes of h are exactly 0 (padded w1 columns and b1 entries are 0),
    # so sum(h) needs no mask; each centered pad lane contributes mean^2 to
    # sum(c*c), which we subtract in closed form (no iota / where mask).
    inv_h = 1.0 / hidden
    mean = jnp.sum(h, axis=-1, keepdims=True) * inv_h
    c = h - mean
    sumsq = jnp.sum(c * c, axis=-1, keepdims=True)
    var = (sumsq - (h_pad - hidden) * (mean * mean)) * inv_h
    hn = c * jax.lax.rsqrt(var + 1e-5) * g_ref[...] + beta_ref[...]

    # ReLU
    hr = jnp.maximum(hn, 0.0)

    # fc2: [tm, H_PAD] @ [H_PAD, O_PAD] -> [tm, O_PAD].  Padded w2 rows are 0,
    # so pad lanes of hr contribute nothing; only the true output lanes are
    # stored -> the HBM output stays unpadded.
    out = jnp.dot(hr.astype(w2_ref.dtype), w2_ref[...],
                  preferred_element_type=jnp.float32) + b2_ref[...]
    o_ref[...] = out[:, : o_ref.shape[-1]].astype(o_ref.dtype)


def pad_mlp_params(w1_t, b1, gamma, beta, w2_t, b2, compute_dtype=None):
    """Pad / cast parameters once (hoisted out of the per-call wrapper).

    w1_t: [in, hidden] (PyTorch fc1.weight.T), w2_t: [hidden, out].
    compute_dtype: e.g. jnp.bfloat16 to halve DMA / double MXU rate; matmuls
    still accumulate in f32 inside the kernel.
    """
    in_size, hidden = w1_t.shape
    out_size = w2_t.shape[-1]
    h_pad = _round_up(hidden, 128)
    o_pad = _round_up(out_size, 128)
    cdt = jnp.dtype(compute_dtype) if compute_dtype is not None else w1_t.dtype

    return dict(
        in_size=in_size, hidden=hidden, out_size=out_size,
        h_pad=h_pad, o_pad=o_pad,
        # padded / cast tensors consumed by the kernel
        w1=jnp.pad(w1_t, ((0, 0), (0, h_pad - hidden))).astype(cdt),
        b1=jnp.pad(b1.reshape(1, hidden),
                   ((0, 0), (0, h_pad - hidden))).astype(jnp.float32),
        gamma=jnp.pad(gamma.reshape(1, hidden),
                      ((0, 0), (0, h_pad - hidden))).astype(jnp.float32),
        beta=jnp.pad(beta.reshape(1, hidden),
                     ((0, 0), (0, h_pad - hidden))).astype(jnp.float32),
        w2=jnp.pad(w2_t, ((0, h_pad - hidden),
                          (0, o_pad - out_size))).astype(cdt),
        b2=jnp.pad(b2.reshape(1, out_size),
                   ((0, 0), (0, o_pad - out_size))).astype(jnp.float32),
        # unpadded originals for the small-N XLA fallback
        raw=(w1_t, b1, gamma, beta, w2_t, b2),
    )


def mlp_reference(x, w1_t, b1, gamma, beta, w2_t, b2):
    h = x @ w1_t + b1
    mean = jnp.mean(h, axis=-1, keepdims=True)
    var = jnp.mean((h - mean) ** 2, axis=-1, keepdims=True)
    hn = (h - mean) * jax.lax.rsqrt(var + 1e-5) * gamma + beta
    return jnp.maximum(hn, 0.0) @ w2_t + b2


def mlp_pallas(x, params, *, tm: int = 1024, fallback_rows: int = 256):
    """x: [..., input_size] -> [..., output_size]."""
    in_size = params["in_size"]
    hidden = params["hidden"]
    out_size = params["out_size"]
    h_pad, o_pad = params["h_pad"], params["o_pad"]
    lead = x.shape[:-1]
    n = math.prod(lead) if lead else 1
    out_dtype = x.dtype

    # Tiny problems: pallas_call launch + layout ops dominate -> fused XLA wins.
    if n < fallback_rows:
        return mlp_reference(x, *params["raw"]).astype(out_dtype)

    cdt = params["w1"].dtype
    x2d = x.reshape(n, in_size)
    if x2d.dtype != cdt:
        x2d = x2d.astype(cdt)

    # Row tiling: sublane aligned, large tiles, but always >=2 grid steps so
    # the "parallel" grid can be sharded across v7x's two TensorCores.
    n_aligned = _round_up(n, 8)
    tm = _round_up(min(tm, n_aligned), 8)
    if pl.cdiv(n, tm) < 2 and n_aligned >= 16:
        tm = _round_up(pl.cdiv(n_aligned, 2), 8)
    grid = (pl.cdiv(n, tm),)

    # Scoped-VMEM request sized from the real footprint (cap 32 MiB for v7x).
    bpe = jnp.dtype(cdt).itemsize
    obpe = jnp.dtype(out_dtype).itemsize
    est = (2 * tm * (in_size * bpe + out_size * obpe)        # pipelined x / out
           + (in_size * h_pad + h_pad * o_pad) * bpe         # resident weights
           + (4 * h_pad + o_pad) * 4                         # biases / LN params
           + 8 * tm * h_pad * 4)                             # f32 intermediates
    vmem_limit = int(min(32 << 20, max(16 << 20, 2 * est)))

    resident = lambda shape: pl.BlockSpec(shape, lambda i: (0, 0))

    flops = 2 * n * (in_size * hidden + hidden * out_size)
    bytes_accessed = (n * in_size * bpe + n * out_size * obpe
                      + (in_size * h_pad + h_pad * o_pad) * bpe
                      + (4 * h_pad + o_pad) * 4)

    out2d = pl.pallas_call(
        functools.partial(mlp_kernel, hidden=hidden),
        out_shape=jax.ShapeDtypeStruct((n, out_size), out_dtype),
        grid=grid,
        in_specs=[
            pl.BlockSpec((tm, in_size), lambda i: (i, 0)),   # x: row tiled
            resident((in_size, h_pad)),                      # w1 (resident)
            resident((1, h_pad)),                            # b1
            resident((1, h_pad)),                            # gamma
            resident((1, h_pad)),                            # beta
            resident((h_pad, o_pad)),                        # w2
            resident((1, o_pad)),                            # b2
        ],
        out_specs=pl.BlockSpec((tm, out_size), lambda i: (i, 0)),
        compiler_params=pltpu.CompilerParams(
            dimension_semantics=("parallel",),
            vmem_limit_bytes=vmem_limit,
        ),
        cost_estimate=pl.CostEstimate(
            flops=flops, transcendentals=n, bytes_accessed=bytes_accessed),
    )(x2d, params["w1"], params["b1"], params["gamma"], params["beta"],
      params["w2"], params["b2"])

    return out2d.reshape(*lead, out_size)


if __name__ == "__main__":
    # Module config: MLP(input_size=32, output_size=16, hidden_size=64)
    input_size, output_size, hidden_size = 32, 16, 64

    key = jax.random.PRNGKey(0)
    kx1, kx2, kw1, kb1, kw2, kb2 = jax.random.split(key, 6)

    # Deterministic params (PyTorch Linear weight is [out, in]; we keep the
    # transposed [in, out] form so the kernel computes x @ W + b).
    bound1 = 1.0 / (input_size ** 0.5)
    w1_t = jax.random.uniform(kw1, (input_size, hidden_size), minval=-bound1,
                              maxval=bound1, dtype=jnp.float32)
    b1 = jax.random.uniform(kb1, (hidden_size,), minval=-bound1, maxval=bound1,
                            dtype=jnp.float32)
    gamma = jnp.ones((hidden_size,), dtype=jnp.float32)    # LayerNorm weight
    beta = jnp.zeros((hidden_size,), dtype=jnp.float32)    # LayerNorm bias
    bound2 = 1.0 / (hidden_size ** 0.5)
    w2_t = jax.random.uniform(kw2, (hidden_size, output_size), minval=-bound2,
                              maxval=bound2, dtype=jnp.float32)
    b2 = jax.random.uniform(kb2, (output_size,), minval=-bound2, maxval=bound2,
                            dtype=jnp.float32)

    params = pad_mlp_params(w1_t, b1, gamma, beta, w2_t, b2)

    # --- Pallas kernel path (enough rows for >=2 grid steps / both v7x TCs).
    x_big = jax.random.normal(kx1, (4, 256, input_size), dtype=jnp.float32)
    out_big = jax.block_until_ready(mlp_pallas(x_big, params))
    ref_big = mlp_reference(x_big, w1_t, b1, gamma, beta, w2_t, b2)
    assert out_big.shape == (4, 256, output_size)
    assert jnp.allclose(out_big, ref_big, atol=1e-4, rtol=1e-4)

    # --- Tiny input (batch=2, seq=8): plain-XLA fallback path.
    x_small = jax.random.normal(kx2, (2, 8, input_size), dtype=jnp.float32)
    out_small = jax.block_until_ready(mlp_pallas(x_small, params))
    ref_small = mlp_reference(x_small, w1_t, b1, gamma, beta, w2_t, b2)
    assert out_small.shape == (2, 8, output_size)
    assert jnp.allclose(out_small, ref_small, atol=1e-5, rtol=1e-5)

    # --- bf16 compute path (halves DMA / doubles MXU rate on v6e & v7x; the
    # matmuls still accumulate in f32 and LN/ReLU run on the f32 accumulator).
    params_bf16 = pad_mlp_params(w1_t, b1, gamma, beta, w2_t, b2,
                                 compute_dtype=jnp.bfloat16)
    out_bf16 = jax.block_until_ready(mlp_pallas(x_big, params_bf16))
    assert out_bf16.shape == (4, 256, output_size)
    assert jnp.allclose(out_bf16, ref_big, atol=5e-2, rtol=5e-2)

    print("KERNEL_OK")
</pallas_src>

<mosaic_0001>
module attributes {stable_mosaic.version = 11 : i64} {
  func.func @mlp_kernel(%arg0: i32, %arg1: memref<512x32xf32, #tpu.memory_space<vmem>>, %arg2: memref<32x128xf32, #tpu.memory_space<vmem>>, %arg3: memref<1x128xf32, #tpu.memory_space<vmem>>, %arg4: memref<1x128xf32, #tpu.memory_space<vmem>>, %arg5: memref<1x128xf32, #tpu.memory_space<vmem>>, %arg6: memref<128x128xf32, #tpu.memory_space<vmem>>, %arg7: memref<1x128xf32, #tpu.memory_space<vmem>>, %arg8: memref<512x16xf32, #tpu.memory_space<vmem>>) attributes {dimension_semantics = [#tpu.dimension_semantics<parallel>], iteration_bounds = array<i64: 2>, scalar_prefetch = 0 : i64, scratch_operands = 0 : i64, tpu.core_type = #tpu.core_type<tc>, window_params = [{transform_indices = @transform_0, window_bounds = array<i64: 512, 32>}, {pipeline_mode = #tpu.pipeline_mode<synchronous>, transform_indices = @transform_1, window_bounds = array<i64: 32, 128>}, {pipeline_mode = #tpu.pipeline_mode<synchronous>, transform_indices = @transform_2, window_bounds = array<i64: 1, 128>}, {pipeline_mode = #tpu.pipeline_mode<synchronous>, transform_indices = @transform_3, window_bounds = array<i64: 1, 128>}, {pipeline_mode = #tpu.pipeline_mode<synchronous>, transform_indices = @transform_4, window_bounds = array<i64: 1, 128>}, {pipeline_mode = #tpu.pipeline_mode<synchronous>, transform_indices = @transform_5, window_bounds = array<i64: 128, 128>}, {pipeline_mode = #tpu.pipeline_mode<synchronous>, transform_indices = @transform_6, window_bounds = array<i64: 1, 128>}, {transform_indices = @transform_7, window_bounds = array<i64: 512, 16>}]} {
    %c0 = arith.constant 0 : index
    %c0_0 = arith.constant 0 : index
    %0 = vector.load %arg1[%c0, %c0_0] : memref<512x32xf32, #tpu.memory_space<vmem>>, vector<512x32xf32>
    %c0_1 = arith.constant 0 : index
    %c0_2 = arith.constant 0 : index
    %1 = vector.load %arg2[%c0_1, %c0_2] : memref<32x128xf32, #tpu.memory_space<vmem>>, vector<32x128xf32>
    %cst = arith.constant dense<0.000000e+00> : vector<512x128xf32>
    %2 = tpu.matmul %0, %1, %cst {dimension_numbers = #tpu.dot_dimension_numbers<[1], [0], [0], [1], [0, 0, 1, 1], [], []>} : vector<512x32xf32>, vector<32x128xf32>, vector<512x128xf32> -> vector<512x128xf32>
    %c0_3 = arith.constant 0 : index
    %c0_4 = arith.constant 0 : index
    %3 = vector.load %arg3[%c0_3, %c0_4] : memref<1x128xf32, #tpu.memory_space<vmem>>, vector<1x128xf32>
    %4 = vector.broadcast %3 : vector<1x128xf32> to vector<512x128xf32>
    %5 = arith.addf %2, %4 : vector<512x128xf32>
    %cst_5 = arith.constant dense<0.000000e+00> : vector<512xf32>
    %6 = vector.multi_reduction <add>, %5, %cst_5 [1] : vector<512x128xf32> to vector<512xf32>
    %7 = vector.shape_cast %6 : vector<512xf32> to vector<512x1xf32>
    %cst_6 = arith.constant 1.562500e-02 : f32
    %8 = vector.broadcast %cst_6 : f32 to vector<512x1xf32>
    %9 = arith.mulf %7, %8 : vector<512x1xf32>
    %10 = vector.broadcast %9 : vector<512x1xf32> to vector<512x128xf32>
    %11 = arith.subf %5, %10 : vector<512x128xf32>
    %12 = arith.mulf %11, %11 : vector<512x128xf32>
    %cst_7 = arith.constant dense<0.000000e+00> : vector<512xf32>
    %13 = vector.multi_reduction <add>, %12, %cst_7 [1] : vector<512x128xf32> to vector<512xf32>
    %14 = vector.shape_cast %13 : vector<512xf32> to vector<512x1xf32>
    %15 = arith.mulf %9, %9 : vector<512x1xf32>
    %cst_8 = arith.constant 6.400000e+01 : f32
    %16 = vector.broadcast %cst_8 : f32 to vector<512x1xf32>
    %17 = arith.mulf %16, %15 : vector<512x1xf32>
    %18 = arith.subf %14, %17 : vector<512x1xf32>
    %cst_9 = arith.constant 1.562500e-02 : f32
    %19 = vector.broadcast %cst_9 : f32 to vector<512x1xf32>
    %20 = arith.mulf %18, %19 : vector<512x1xf32>
    %cst_10 = arith.constant 9.99999974E-6 : f32
    %21 = vector.broadcast %cst_10 : f32 to vector<512x1xf32>
    %22 = arith.addf %20, %21 : vector<512x1xf32>
    %23 = math.rsqrt %22 : vector<512x1xf32>
    %24 = vector.broadcast %23 : vector<512x1xf32> to vector<512x128xf32>
    %25 = arith.mulf %11, %24 : vector<512x128xf32>
    %c0_11 = arith.constant 0 : index
    %c0_12 = arith.constant 0 : index
    %26 = vector.load %arg4[%c0_11, %c0_12] : memref<1x128xf32, #tpu.memory_space<vmem>>, vector<1x128xf32>
    %27 = vector.broadcast %26 : vector<1x128xf32> to vector<512x128xf32>
    %28 = arith.mulf %25, %27 : vector<512x128xf32>
    %c0_13 = arith.constant 0 : index
    %c0_14 = arith.constant 0 : index
    %29 = vector.load %arg5[%c0_13, %c0_14] : memref<1x128xf32, #tpu.memory_space<vmem>>, vector<1x128xf32>
    %30 = vector.broadcast %29 : vector<1x128xf32> to vector<512x128xf32>
    %31 = arith.addf %28, %30 : vector<512x128xf32>
    %cst_15 = arith.constant 0.000000e+00 : f32
    %32 = vector.broadcast %cst_15 : f32 to vector<512x128xf32>
    %33 = arith.maximumf %31, %32 : vector<512x128xf32>
    %c0_16 = arith.constant 0 : index
    %c0_17 = arith.constant 0 : index
    %34 = vector.load %arg6[%c0_16, %c0_17] : memref<128x128xf32, #tpu.memory_space<vmem>>, vector<128x128xf32>
    %cst_18 = arith.constant dense<0.000000e+00> : vector<512x128xf32>
    %35 = tpu.matmul %33, %34, %cst_18 {dimension_numbers = #tpu.dot_dimension_numbers<[1], [0], [0], [1], [0, 0, 1, 1], [], []>} : vector<512x128xf32>, vector<128x128xf32>, vector<512x128xf32> -> vector<512x128xf32>
    %c0_19 = arith.constant 0 : index
    %c0_20 = arith.constant 0 : index
    %36 = vector.load %arg7[%c0_19, %c0_20] : memref<1x128xf32, #tpu.memory_space<vmem>>, vector<1x128xf32>
    %37 = vector.broadcast %36 : vector<1x128xf32> to vector<512x128xf32>
    %38 = arith.addf %35, %37 : vector<512x128xf32>
    %39 = vector.extract_strided_slice %38 {offsets = [0, 0], sizes = [512, 16], strides = [1, 1]} : vector<512x128xf32> to vector<512x16xf32>
    %c0_21 = arith.constant 0 : index
    %c0_22 = arith.constant 0 : index
    %40 = vector.load %arg8[%c0_21, %c0_22] : memref<512x16xf32, #tpu.memory_space<vmem>>, vector<512x16xf32>
    tpu.vector_store %arg8[%c0_21, %c0_22], %39 {strides = array<i32>} : memref<512x16xf32, #tpu.memory_space<vmem>>, vector<512x16xf32>,
    return
  }
  func.func @transform_0(%arg0: i32) -> (i32, i32) {
    %c0_i32 = arith.constant 0 : i32
    %c0_i32_0 = arith.constant 0 : i32
    return %arg0, %c0_i32 : i32, i32
  }
  func.func @transform_1(%arg0: i32) -> (i32, i32) {
    %c0_i32 = arith.constant 0 : i32
    %c0_i32_0 = arith.constant 0 : i32
    %c0_i32_1 = arith.constant 0 : i32
    return %c0_i32, %c0_i32_0 : i32, i32
  }
  func.func @transform_2(%arg0: i32) -> (i32, i32) {
    %c0_i32 = arith.constant 0 : i32
    %c0_i32_0 = arith.constant 0 : i32
    %c0_i32_1 = arith.constant 0 : i32
    return %c0_i32, %c0_i32_0 : i32, i32
  }
  func.func @transform_3(%arg0: i32) -> (i32, i32) {
    %c0_i32 = arith.constant 0 : i32
    %c0_i32_0 = arith.constant 0 : i32
    %c0_i32_1 = arith.constant 0 : i32
    return %c0_i32, %c0_i32_0 : i32, i32
  }
  func.func @transform_4(%arg0: i32) -> (i32, i32) {
    %c0_i32 = arith.constant 0 : i32
    %c0_i32_0 = arith.constant 0 : i32
    %c0_i32_1 = arith.constant 0 : i32
    return %c0_i32, %c0_i32_0 : i32, i32
  }
  func.func @transform_5(%arg0: i32) -> (i32, i32) {
    %c0_i32 = arith.constant 0 : i32
    %c0_i32_0 = arith.constant 0 : i32
    %c0_i32_1 = arith.constant 0 : i32
    return %c0_i32, %c0_i32_0 : i32, i32
  }
  func.func @transform_6(%arg0: i32) -> (i32, i32) {
    %c0_i32 = arith.constant 0 : i32
    %c0_i32_0 = arith.constant 0 : i32
    %c0_i32_1 = arith.constant 0 : i32
    return %c0_i32, %c0_i32_0 : i32, i32
  }
  func.func @transform_7(%arg0: i32) -> (i32, i32) {
    %c0_i32 = arith.constant 0 : i32
    %c0_i32_0 = arith.constant 0 : i32
    return %arg0, %c0_i32 : i32, i32
  }
}

</mosaic_0001>

<bundles_post_ra>
// kernel: tpu_custom_call.1
= control target key start
LH: loop header
LB: loop body
LE: loop exit
PB: predicated region body
PF: predicated region fallthrough
CT: control target
= control target key end

     0   :  { %s3243_s24 = smov 0   ;;  %s4967_s0 = inlined_call_operand.vmem [shape: f32[1024,32], index: 0, kind: input, shape index: {}]   ;;  %s4968_s1 = inlined_call_operand.vmem [shape: f32[32,128], index: 1, kind: input, shape index: {}]   ;;  %s4969_s2 = inlined_call_operand.vmem [shape: f32[1,128], index: 2, kind: input, shape index: {}]   ;;  %s4970_s3 = inlined_call_operand.vmem [shape: f32[1,128], index: 3, kind: input, shape index: {}]   ;;  %s4971_s4 = inlined_call_operand.vmem [shape: f32[1,128], index: 4, kind: input, shape index: {}]   ;;  %s4972_s5 = inlined_call_operand.vmem [shape: f32[128,128], index: 5, kind: input, shape index: {}]   ;;  %s4973_s6 = inlined_call_operand.vmem [shape: f32[1,128], index: 6, kind: input, shape index: {}]   ;;  %s4974_s7 = inlined_call_operand.vmem [shape: f32[1024,16], index: 7, kind: output, shape index: {}]  }
   0x1 LB: > { %s2566_s25 = sadd.s32 4294967295, %s3201_s24   ;;  %p2570_p0 = scmp.ge.s32.totalorder %s3201_s24, 1  ;;  %s3201_s24 = sphi %s3243_s24, %s17_s24  }
   0x2   : > { %p238_p1 = scmp.lt.s32.totalorder %s3201_s24, 3 }
   0x4   : > { %p239_p2 = pnand %p2570_p0, %p238_p1 }
   0x6   : > { %242 = sbr.rel (%p239_p2) target bundleno = 889 (0x379), region = 48 }
   0xb   : > { %v349_v0 = vld [vmem:[%s4968_s1 + $0x18] sm:$0xff]  ;;  %v348_v1 = vld [vmem:[%s4968_s1 + $0x10] sm:$0xff]  ;;  %s2571_s30 = sshll.u32 %s2566_s25, 6  ;;  %v347_v2 = vld [vmem:[%s4968_s1 + $0x8] sm:$0xff]  ;;  %vm357_vm0 = vcmask 261120   ;;  %vm2445_vm1 = vcmask 130048  }
   0xc   : > { %2793 = vmatprep.subr.mxu0 %v349_v0  ;;  %p271_p3 = scmp.lt.s32.totalorder %s2571_s30, 127  ;;  %v346_v3 = vld [vmem:[%s4968_s1] sm:$0xff] }
   0xd   : > { %2794 = vmatpush3.msra.mxu0 %v349_v0 }
   0xe   : > { %2795 = vmatprep.subr.mxu0 %v348_v1  ;;  %s5270_s30 = smov (!%p271_p3, %s2571_s30), 127 }
   0xf   : > { %2796 = vmatpush3.msra.mxu0 %v348_v1  ;;  %s2572_s12 = sshll.u32 %s5270_s30, 3 }
  0x10   : > { %2797 = vmatprep.subr.mxu0 %v347_v2  ;;  %s3271_s15 = scalar_lea.vmem %s4967_s0, %s2572_s12  ;;  %s4770_s22 = scalar_lea.vmem %s4974_s7, %s2572_s12 }
  0x11   : > { %2798 = vmatpush3.msra.mxu0 %v347_v2  ;;  %v282_v4 = vld [vmem:[%s3271_s15] sm:$0xff]  ;;  %v283_v5 = vld [vmem:[%s3271_s15 + $0x8] sm:$0xff]  ;;  %v284_v6 = vld [vmem:[%s3271_s15 + $0x10] sm:$0xff] }
  0x12   : > { %2799 = vmatprep.subr.mxu0 %v346_v3  ;;  %2801 = vmatprep.mubr.msk.f32.mxu0 %vm357_vm0, %v282_v4  ;;  %v285_v7 = vld [vmem:[%s3271_s15 + $0x18] sm:$0xff]  ;;  %v286_v8 = vld [vmem:[%s3271_s15 + $0x20] sm:$0xff]  ;;  %v287_v9 = vld [vmem:[%s3271_s15 + $0x28] sm:$0xff] }
  0x13   : > { %2800 = vmatpush3.msra.mxu0 %v346_v3  ;;  %v288_v10 = vld [vmem:[%s3271_s15 + $0x30] sm:$0xff]  ;;  %v289_v11 = vld [vmem:[%s3271_s15 + $0x38] sm:$0xff]  ;;  %v290_v12 = vld [vmem:[%s3271_s15 + $0x40] sm:$0xff] }
  0x14   : > { %2802 = vmatmul.mubr.msk.f32.vlgmr.msra.gmra.mxu0 %vm357_vm0, %v283_v5  ;;  %v291_v13 = vld [vmem:[%s3271_s15 + $0x48] sm:$0xff]  ;;  %v292_v14 = vld [vmem:[%s3271_s15 + $0x50] sm:$0xff]  ;;  %v293_v15 = vld [vmem:[%s3271_s15 + $0x58] sm:$0xff] }
  0x15   : > { %2804 = vmatprep.mubr.msk.f32.mxu0 %vm357_vm0, %v284_v6  ;;  %v294_v16 = vld [vmem:[%s3271_s15 + $0x60] sm:$0xff]  ;;  %v295_v17 = vld [vmem:[%s3271_s15 + $0x68] sm:$0xff]  ;;  %v296_v18 = vld [vmem:[%s3271_s15 + $0x70] sm:$0xff] }
  0x16   : > { %v297_v19 = vld [vmem:[%s3271_s15 + $0x78] sm:$0xff]  ;;  %v298_v20 = vld [vmem:[%s3271_s15 + $0x80] sm:$0xff]  ;;  %v299_v21 = vld [vmem:[%s3271_s15 + $0x88] sm:$0xff] }
  0x17   : > { %v300_v22 = vld [vmem:[%s3271_s15 + $0x90] sm:$0xff]  ;;  %v301_v23 = vld [vmem:[%s3271_s15 + $0x98] sm:$0xff]  ;;  %v302_v24 = vld [vmem:[%s3271_s15 + $0xa0] sm:$0xff] }
  0x18   : > { %2805 = vmatmul.mubr.msk.f32.gmra.mxu0 %vm357_vm0, %v285_v7  ;;  %v303_v25 = vld [vmem:[%s3271_s15 + $0xa8] sm:$0xff]  ;;  %v304_v26 = vld [vmem:[%s3271_s15 + $0xb0] sm:$0xff]  ;;  %v305_v27 = vld [vmem:[%s3271_s15 + $0xb8] sm:$0xff] }
  0x19   : > { %2807 = vmatprep.mubr.msk.f32.mxu0 %vm357_vm0, %v286_v8  ;;  %v306_v28 = vld [vmem:[%s3271_s15 + $0xc0] sm:$0xff]  ;;  %v307_v29 = vld [vmem:[%s3271_s15 + $0xc8] sm:$0xff]  ;;  %v308_v30 = vld [vmem:[%s3271_s15 + $0xd0] sm:$0xff] }
  0x1a   : > { %v309_v31 = vld [vmem:[%s3271_s15 + $0xd8] sm:$0xff]  ;;  %v310_v32 = vld [vmem:[%s3271_s15 + $0xe0] sm:$0xff]  ;;  %v311_v33 = vld [vmem:[%s3271_s15 + $0xe8] sm:$0xff] }
  0x1b   : > { %v312_v34 = vld [vmem:[%s3271_s15 + $0xf0] sm:$0xff]  ;;  %v313_v35 = vld [vmem:[%s3271_s15 + $0xf8] sm:$0xff]  ;;  %v314_v36 = vld [vmem:[%s3271_s15 + $0x100] sm:$0xff] }
  0x1c   : > { %2808 = vmatmul.mubr.msk.f32.gmra.mxu0 %vm357_vm0, %v287_v9  ;;  %v315_v37 = vld [vmem:[%s3271_s15 + $0x108] sm:$0xff]  ;;  %v316_v38 = vld [vmem:[%s3271_s15 + $0x110] sm:$0xff]  ;;  %v317_v39 = vld [vmem:[%s3271_s15 + $0x118] sm:$0xff] }
  0x1d   : > { %2810 = vmatprep.mubr.msk.f32.mxu0 %vm357_vm0, %v288_v10  ;;  %v318_v40 = vld [vmem:[%s3271_s15 + $0x120] sm:$0xff]  ;;  %v319_v41 = vld [vmem:[%s3271_s15 + $0x128] sm:$0xff]  ;;  %v320_v42 = vld [vmem:[%s3271_s15 + $0x130] sm:$0xff] }
  0x1e   : > { %v321_v43 = vld [vmem:[%s3271_s15 + $0x138] sm:$0xff]  ;;  %v322_v44 = vld [vmem:[%s3271_s15 + $0x140] sm:$0xff]  ;;  %v323_v45 = vld [vmem:[%s3271_s15 + $0x148] sm:$0xff] }
  0x1f   : > { %v324_v46 = vld [vmem:[%s3271_s15 + $0x150] sm:$0xff]  ;;  %v325_v47 = vld [vmem:[%s3271_s15 + $0x158] sm:$0xff]  ;;  %v326_v48 = vld [vmem:[%s3271_s15 + $0x160] sm:$0xff] }
  0x20   : > { %2811 = vmatmul.mubr.msk.f32.gmra.mxu0 %vm357_vm0, %v289_v11  ;;  %v327_v49 = vld [vmem:[%s3271_s15 + $0x168] sm:$0xff]  ;;  %v328_v50 = vld [vmem:[%s3271_s15 + $0x170] sm:$0xff]  ;;  %v329_v51 = vld [vmem:[%s3271_s15 + $0x178] sm:$0xff] }
  0x21   : > { %2813 = vmatprep.mubr.msk.f32.mxu0 %vm357_vm0, %v290_v12  ;;  %v330_v52 = vld [vmem:[%s3271_s15 + $0x180] sm:$0xff]  ;;  %v331_v53 = vld [vmem:[%s3271_s15 + $0x188] sm:$0xff]  ;;  %v332_v54 = vld [vmem:[%s3271_s15 + $0x190] sm:$0xff] }
  0x22   : > { %v333_v55 = vld [vmem:[%s3271_s15 + $0x198] sm:$0xff]  ;;  %v334_v56 = vld [vmem:[%s3271_s15 + $0x1a0] sm:$0xff]  ;;  %v335_v57 = vld [vmem:[%s3271_s15 + $0x1a8] sm:$0xff] }
  0x23   : > { %v336_v58 = vld [vmem:[%s3271_s15 + $0x1b0] sm:$0xff]  ;;  %v337_v59 = vld [vmem:[%s3271_s15 + $0x1b8] sm:$0xff]  ;;  %v338_v60 = vld [vmem:[%s3271_s15 + $0x1c0] sm:$0xff] }
  0x24   : > { %2814 = vmatmul.mubr.msk.f32.gmra.mxu0 %vm357_vm0, %v291_v13  ;;  %v339_v61 = vld [vmem:[%s3271_s15 + $0x1c8] sm:$0xff]  ;;  %v340_v62 = vld [vmem:[%s3271_s15 + $0x1d0] sm:$0xff]  ;;  %v341_v63 = vld [vmem:[%s3271_s15 + $0x1d8] sm:$0xff] }
  0x25   : > { %2816 = vmatprep.mubr.msk.f32.mxu0 %vm357_vm0, %v292_v14  ;;  %v342_v0 = vld [vmem:[%s3271_s15 + $0x1e0] sm:$0xff]  ;;  %v343_v1 = vld [vmem:[%s3271_s15 + $0x1e8] sm:$0xff]  ;;  %v344_v2 = vld [vmem:[%s3271_s15 + $0x1f0] sm:$0xff] }
  0x26   : > { %v345_v3 = vld [vmem:[%s3271_s15 + $0x1f8] sm:$0xff]  ;;  %v3404_v4 = vld [vmem:[%s4969_s2] ss:$0 sm:$0xff] }
  0x28   : > { %2817 = vmatmul.mubr.msk.f32.gmra.mxu0 %vm357_vm0, %v293_v15 }
  0x29   : > { %2819 = vmatprep.mubr.msk.f32.mxu0 %vm357_vm0, %v294_v16 }
  0x2c   : > { %2820 = vmatmul.mubr.msk.f32.gmra.mxu0 %vm357_vm0, %v295_v17 }
  0x2d   : > { %2822 = vmatprep.mubr.msk.f32.mxu0 %vm357_vm0, %v296_v18 }
  0x30   : > { %2823 = vmatmul.mubr.msk.f32.gmra.mxu0 %vm357_vm0, %v297_v19 }
  0x31   : > { %2825 = vmatprep.mubr.msk.f32.mxu0 %vm357_vm0, %v298_v20 }
  0x34   : > { %2826 = vmatmul.mubr.msk.f32.gmra.mxu0 %vm357_vm0, %v299_v21 }
  0x35   : > { %2828 = vmatprep.mubr.msk.f32.mxu0 %vm357_vm0, %v300_v22 }
  0x38   : > { %2829 = vmatmul.mubr.msk.f32.gmra.mxu0 %vm357_vm0, %v301_v23 }
  0x39   : > { %2831 = vmatprep.mubr.msk.f32.mxu0 %vm357_vm0, %v302_v24 }
  0x3c   : > { %2832 = vmatmul.mubr.msk.f32.gmra.mxu0 %vm357_vm0, %v303_v25 }
  0x3d   : > { %2834 = vmatprep.mubr.msk.f32.mxu0 %vm357_vm0, %v304_v26 }
  0x40   : > { %2835 = vmatmul.mubr.msk.f32.gmra.mxu0 %vm357_vm0, %v305_v27 }
  0x41   : > { %2837 = vmatprep.mubr.msk.f32.mxu0 %vm357_vm0, %v306_v28 }
  0x44   : > { %2838 = vmatmul.mubr.msk.f32.gmra.mxu0 %vm357_vm0, %v307_v29 }
  0x45   : > { %2840 = vmatprep.mubr.msk.f32.mxu0 %vm357_vm0, %v308_v30 }
  0x48   : > { %2841 = vmatmul.mubr.msk.f32.gmra.mxu0 %vm357_vm0, %v309_v31 }
  0x49   : > { %2843 = vmatprep.mubr.msk.f32.mxu0 %vm357_vm0, %v310_v32 }
  0x4c   : > { %2844 = vmatmul.mubr.msk.f32.gmra.mxu0 %vm357_vm0, %v311_v33 }
  0x4d   : > { %2846 = vmatprep.mubr.msk.f32.mxu0 %vm357_vm0, %v312_v34 }
  0x50   : > { %2847 = vmatmul.mubr.msk.f32.gmra.mxu0 %vm357_vm0, %v313_v35 }
  0x51   : > { %2849 = vmatprep.mubr.msk.f32.mxu0 %vm357_vm0, %v314_v36 }
  0x54   : > { %2850 = vmatmul.mubr.msk.f32.gmra.mxu0 %vm357_vm0, %v315_v37 }
  0x55   : > { %2852 = vmatprep.mubr.msk.f32.mxu0 %vm357_vm0, %v316_v38 }
  0x58   : > { %2853 = vmatmul.mubr.msk.f32.gmra.mxu0 %vm357_vm0, %v317_v39 }
  0x59   : > { %2855 = vmatprep.mubr.msk.f32.mxu0 %vm357_vm0, %v318_v40 }
  0x5c   : > { %2856 = vmatmul.mubr.msk.f32.gmra.mxu0 %vm357_vm0, %v319_v41 }
  0x5d   : > { %2858 = vmatprep.mubr.msk.f32.mxu0 %vm357_vm0, %v320_v42 }
  0x60   : > { %2859 = vmatmul.mubr.msk.f32.gmra.mxu0 %vm357_vm0, %v321_v43 }
  0x61   : > { %2861 = vmatprep.mubr.msk.f32.mxu0 %vm357_vm0, %v322_v44 }
  0x64   : > { %2862 = vmatmul.mubr.msk.f32.gmra.mxu0 %vm357_vm0, %v323_v45 }
  0x65   : > { %2864 = vmatprep.mubr.msk.f32.mxu0 %vm357_vm0, %v324_v46 }
  0x68   : > { %2865 = vmatmul.mubr.msk.f32.gmra.mxu0 %vm357_vm0, %v325_v47 }
  0x69   : > { %2867 = vmatprep.mubr.msk.f32.mxu0 %vm357_vm0, %v326_v48 }
  0x6c   : > { %2868 = vmatmul.mubr.msk.f32.gmra.mxu0 %vm357_vm0, %v327_v49 }
  0x6d   : > { %2870 = vmatprep.mubr.msk.f32.mxu0 %vm357_vm0, %v328_v50 }
  0x70   : > { %2871 = vmatmul.mubr.msk.f32.gmra.mxu0 %vm357_vm0, %v329_v51 }
  0x71   : > { %2873 = vmatprep.mubr.msk.f32.mxu0 %vm357_vm0, %v330_v52 }
  0x74   : > { %2874 = vmatmul.mubr.msk.f32.gmra.mxu0 %vm357_vm0, %v331_v53 }
  0x75   : > { %2876 = vmatprep.mubr.msk.f32.mxu0 %vm357_vm0, %v332_v54 }
  0x78   : > { %2877 = vmatmul.mubr.msk.f32.gmra.mxu0 %vm357_vm0, %v333_v55 }
  0x79   : > { %2879 = vmatprep.mubr.msk.f32.mxu0 %vm357_vm0, %v334_v56 }
  0x7c   : > { %2880 = vmatmul.mubr.msk.f32.gmra.mxu0 %vm357_vm0, %v335_v57 }
  0x7d   : > { %2882 = vmatprep.mubr.msk.f32.mxu0 %vm357_vm0, %v336_v58 }
  0x80   : > { %2883 = vmatmul.mubr.msk.f32.gmra.mxu0 %vm357_vm0, %v337_v59 }
  0x81   : > { %2885 = vmatprep.mubr.msk.f32.mxu0 %vm357_vm0, %v338_v60 }
  0x84   : > { %2886 = vmatmul.mubr.msk.f32.gmra.mxu0 %vm357_vm0, %v339_v61 }
  0x85   : > { %2888 = vmatprep.mubr.msk.f32.mxu0 %vm357_vm0, %v340_v62 }
  0x88   : > { %2889 = vmatmul.mubr.msk.f32.gmra.mxu0 %vm357_vm0, %v341_v63 }
  0x89   : > { %2891 = vmatprep.mubr.msk.f32.mxu0 %vm357_vm0, %v342_v0 }
  0x8c   : > { %2892 = vmatmul.mubr.msk.f32.gmra.mxu0 %vm357_vm0, %v343_v1 }
  0x8d   : > { %2894 = vmatprep.mubr.msk.f32.mxu0 %vm357_vm0, %v344_v2 }
  0x90   : > { %2895 = vmatmul.mubr.msk.f32.gmra.mxu0 %vm357_vm0, %v345_v3 }
  0xd4   : > { %v2803_v5 = vpop.f32.mrf.mxu0 }
  0xd5   : > { %v3407_v6 = vadd.f32 %v2803_v5, %v3404_v4 }
  0xd6   : > { %v616_v7 = vpop.f32.mrf.mxu0 }
  0xd7   : > { %v3410_v8 = vadd.f32 %v3404_v4, %v616_v7  ;;  %937 = vadd.xlane.f32.xlu1 %v3407_v6 }
  0xd8   : > { %v2806_v9 = vpop.f32.mrf.mxu0 }
  0xd9   : > { %v3414_v10 = vadd.f32 %v2806_v9, %v3404_v4  ;;  %935 = vadd.xlane.f32.xlu0 %v3410_v8 }
  0xda   : > { %v626_v11 = vpop.f32.mrf.mxu0 }
  0xdb   : > { %5071 = vst [vmem:[#allocation2_spill] sm:$0xff] %v3414_v10  ;;  %v3418_v12 = vadd.f32 %v3404_v4, %v626_v11  ;;  %941 = vadd.xlane.f32.xlu1 %v3414_v10 }
  0xdc   : > { %v2809_v13 = vpop.f32.mrf.mxu0 }
  0xdd   : > { %5072 = vst [vmem:[#allocation3_spill] sm:$0xff] %v3418_v12  ;;  %v3422_v14 = vadd.f32 %v2809_v13, %v3404_v4  ;;  %939 = vadd.xlane.f32.xlu0 %v3418_v12 }
  0xde   : > { %v636_v15 = vpop.f32.mrf.mxu0 }
  0xdf   : > { %5073 = vst [vmem:[#allocation4_spill] sm:$0xff] %v3422_v14  ;;  %v3426_v16 = vadd.f32 %v3404_v4, %v636_v15  ;;  %945 = vadd.xlane.f32.xlu1 %v3422_v14 }
  0xe0   : > { %v2812_v17 = vpop.f32.mrf.mxu0 }
  0xe1   : > { %5074 = vst [vmem:[#allocation5_spill] sm:$0xff] %v3426_v16  ;;  %943 = vadd.xlane.f32.xlu0 %v3426_v16  ;;  %v3431_v19 = vadd.f32 %v2812_v17, %v3404_v4 }
  0xe2   : > { %v646_v18 = vpop.f32.mrf.mxu0 }
  0xe3   : > { %v3438_v23 = vadd.f32 %v3404_v4, %v646_v18 }
  0xe4   : > { %v2815_v20 = vpop.f32.mrf.mxu0 }
  0xe5   : > { %v3434_v21 = vadd.f32 %v2815_v20, %v3404_v4  ;;  %949 = vadd.xlane.f32.xlu0 %v3431_v19 }
  0xe6   : > { %v656_v22 = vpop.f32.mrf.mxu0 }
  0xe7   : > { %953 = vadd.xlane.f32.xlu1 %v3434_v21  ;;  %v3442_v25 = vadd.f32 %v3404_v4, %v656_v22 }
  0xe8   : > { %v2818_v24 = vpop.f32.mrf.mxu0 }
  0xe9   : > { %947 = vadd.xlane.f32.xlu0 %v3438_v23  ;;  %v3450_v29 = vadd.f32 %v2818_v24, %v3404_v4 }
  0xea   : > { %v666_v26 = vpop.f32.mrf.mxu0 }
  0xeb   : > { %v3446_v27 = vadd.f32 %v3404_v4, %v666_v26  ;;  %951 = vadd.xlane.f32.xlu1 %v3442_v25 }
  0xec   : > { %v2821_v28 = vpop.f32.mrf.mxu0 }
  0xed   : > { %955 = vadd.xlane.f32.xlu0 %v3446_v27  ;;  %v3458_v33 = vadd.f32 %v2821_v28, %v3404_v4 }
  0xee   : > { %v676_v30 = vpop.f32.mrf.mxu0 }
  0xef   : > { %v3454_v31 = vadd.f32 %v3404_v4, %v676_v30  ;;  %957 = vadd.xlane.f32.xlu1 %v3450_v29 }
  0xf0   : > { %v2824_v32 = vpop.f32.mrf.mxu0 }
  0xf1   : > { %959 = vadd.xlane.f32.xlu0 %v3454_v31  ;;  %v3466_v37 = vadd.f32 %v2824_v32, %v3404_v4 }
  0xf2   : > { %v686_v34 = vpop.f32.mrf.mxu0 }
  0xf3   : > { %v3462_v35 = vadd.f32 %v3404_v4, %v686_v34  ;;  %961 = vadd.xlane.f32.xlu1 %v3458_v33 }
  0xf4   : > { %v2827_v36 = vpop.f32.mrf.mxu0 }
  0xf5   : > { %963 = vadd.xlane.f32.xlu0 %v3462_v35  ;;  %v3474_v41 = vadd.f32 %v2827_v36, %v3404_v4 }
  0xf6   : > { %v696_v38 = vpop.f32.mrf.mxu0 }
  0xf7   : > { %v3470_v39 = vadd.f32 %v3404_v4, %v696_v38  ;;  %965 = vadd.xlane.f32.xlu1 %v3466_v37 }
  0xf8   : > { %v2830_v40 = vpop.f32.mrf.mxu0 }
  0xf9   : > { %967 = vadd.xlane.f32.xlu0 %v3470_v39  ;;  %v3482_v45 = vadd.f32 %v2830_v40, %v3404_v4 }
  0xfa   : > { %v706_v42 = vpop.f32.mrf.mxu0 }
  0xfb   : > { %v3478_v43 = vadd.f32 %v3404_v4, %v706_v42  ;;  %969 = vadd.xlane.f32.xlu1 %v3474_v41 }
  0xfc   : > { %v2833_v44 = vpop.f32.mrf.mxu0 }
  0xfd   : > { %971 = vadd.xlane.f32.xlu0 %v3478_v43  ;;  %v3490_v49 = vadd.f32 %v2833_v44, %v3404_v4 }
  0xfe   : > { %v716_v46 = vpop.f32.mrf.mxu0 }
  0xff   : > { %v3486_v47 = vadd.f32 %v3404_v4, %v716_v46  ;;  %973 = vadd.xlane.f32.xlu1 %v3482_v45 }
 0x100   : > { %v2836_v48 = vpop.f32.mrf.mxu0 }
 0x101   : > { %975 = vadd.xlane.f32.xlu0 %v3486_v47  ;;  %v3498_v53 = vadd.f32 %v2836_v48, %v3404_v4 }
 0x102   : > { %v726_v50 = vpop.f32.mrf.mxu0 }
 0x103   : > { %v3494_v51 = vadd.f32 %v3404_v4, %v726_v50  ;;  %977 = vadd.xlane.f32.xlu1 %v3490_v49 }
 0x104   : > { %v2839_v52 = vpop.f32.mrf.mxu0 }
 0x105   : > { %979 = vadd.xlane.f32.xlu0 %v3494_v51  ;;  %v3506_v57 = vadd.f32 %v2839_v52, %v3404_v4 }
 0x106   : > { %v736_v54 = vpop.f32.mrf.mxu0 }
 0x107   : > { %v3502_v55 = vadd.f32 %v3404_v4, %v736_v54  ;;  %981 = vadd.xlane.f32.xlu1 %v3498_v53 }
 0x108   : > { %v2842_v56 = vpop.f32.mrf.mxu0 }
 0x109   : > { %983 = vadd.xlane.f32.xlu0 %v3502_v55  ;;  %v3514_v61 = vadd.f32 %v2842_v56, %v3404_v4 }
 0x10a   : > { %v746_v58 = vpop.f32.mrf.mxu0 }
 0x10b   : > { %v3510_v59 = vadd.f32 %v3404_v4, %v746_v58  ;;  %985 = vadd.xlane.f32.xlu1 %v3506_v57 }
 0x10c   : > { %v2845_v60 = vpop.f32.mrf.mxu0 }
 0x10d   : > { %987 = vadd.xlane.f32.xlu0 %v3510_v59  ;;  %v3522_v1 = vadd.f32 %v2845_v60, %v3404_v4 }
 0x10e   : > { %v756_v62 = vpop.f32.mrf.mxu0 }
 0x10f   : > { %v3518_v63 = vadd.f32 %v3404_v4, %v756_v62  ;;  %989 = vadd.xlane.f32.xlu1 %v3514_v61 }
 0x110   : > { %v2848_v0 = vpop.f32.mrf.mxu0 }
 0x111   : > { %991 = vadd.xlane.f32.xlu0 %v3518_v63  ;;  %v3530_v7 = vadd.f32 %v2848_v0, %v3404_v4 }
 0x112   : > { %v766_v2 = vpop.f32.mrf.mxu0 }
 0x113   : > { %v3526_v3 = vadd.f32 %v3404_v4, %v766_v2  ;;  %993 = vadd.xlane.f32.xlu1 %v3522_v1 }
 0x114   : > { %v2851_v5 = vpop.f32.mrf.mxu0 }
 0x115   : > { %995 = vadd.xlane.f32.xlu0 %v3526_v3  ;;  %v3538_v15 = vadd.f32 %v2851_v5, %v3404_v4 }
 0x116   : > { %v776_v9 = vpop.f32.mrf.mxu0 }
 0x117   : > { %v3534_v11 = vadd.f32 %v3404_v4, %v776_v9  ;;  %997 = vadd.xlane.f32.xlu1 %v3530_v7 }
 0x118   : > { %v2854_v13 = vpop.f32.mrf.mxu0 }
 0x119   : > { %999 = vadd.xlane.f32.xlu0 %v3534_v11  ;;  %v3546_v22 = vadd.f32 %v2854_v13, %v3404_v4 }
 0x11a   : > { %v786_v17 = vpop.f32.mrf.mxu0 }
 0x11b   : > { %v3542_v18 = vadd.f32 %v3404_v4, %v786_v17  ;;  %1001 = vadd.xlane.f32.xlu1 %v3538_v15 }
 0x11c   : > { %v2857_v20 = vpop.f32.mrf.mxu0 }
 0x11d   : > { %1003 = vadd.xlane.f32.xlu0 %v3542_v18  ;;  %v3554_v30 = vadd.f32 %v2857_v20, %v3404_v4 }
 0x11e   : > { %v796_v24 = vpop.f32.mrf.mxu0 }
 0x11f   : > { %v3550_v26 = vadd.f32 %v3404_v4, %v796_v24  ;;  %1005 = vadd.xlane.f32.xlu1 %v3546_v22 }
 0x120   : > { %v2860_v28 = vpop.f32.mrf.mxu0 }
 0x121   : > { %1007 = vadd.xlane.f32.xlu0 %v3550_v26  ;;  %v3562_v38 = vadd.f32 %v2860_v28, %v3404_v4 }
 0x122   : > { %v806_v32 = vpop.f32.mrf.mxu0 }
 0x123   : > { %v3558_v34 = vadd.f32 %v3404_v4, %v806_v32  ;;  %1009 = vadd.xlane.f32.xlu1 %v3554_v30 }
 0x124   : > { %v2863_v36 = vpop.f32.mrf.mxu0 }
 0x125   : > { %1011 = vadd.xlane.f32.xlu0 %v3558_v34  ;;  %v3570_v46 = vadd.f32 %v2863_v36, %v3404_v4 }
 0x126   : > { %v816_v40 = vpop.f32.mrf.mxu0 }
 0x127   : > { %v3566_v42 = vadd.f32 %v3404_v4, %v816_v40  ;;  %1013 = vadd.xlane.f32.xlu1 %v3562_v38 }
 0x128   : > { %v2866_v44 = vpop.f32.mrf.mxu0 }
 0x129   : > { %1015 = vadd.xlane.f32.xlu0 %v3566_v42  ;;  %v3578_v54 = vadd.f32 %v2866_v44, %v3404_v4 }
 0x12a   : > { %v826_v48 = vpop.f32.mrf.mxu0 }
 0x12b   : > { %v3574_v50 = vadd.f32 %v3404_v4, %v826_v48  ;;  %1017 = vadd.xlane.f32.xlu1 %v3570_v46 }
 0x12c   : > { %v2869_v52 = vpop.f32.mrf.mxu0 }
 0x12d   : > { %v3581_v56 = vadd.f32 %v2869_v52, %v3404_v4  ;;  %1019 = vadd.xlane.f32.xlu0 %v3574_v50 }
 0x12e   : > { %v836_v58 = vpop.f32.mrf.mxu0 }
 0x12f   : > { %1021 = vadd.xlane.f32.xlu1 %v3578_v54  ;;  %v3587_v0 = vadd.f32 %v3404_v4, %v836_v58 }
 0x130   : > { %v2872_v60 = vpop.f32.mrf.mxu0 }
 0x131   : > { %1025 = vadd.xlane.f32.xlu0 %v3581_v56  ;;  %v3590_v5 = vadd.f32 %v2872_v60, %v3404_v4 }
 0x132   : > { %v846_v62 = vpop.f32.mrf.mxu0 }
 0x133   : > { %v3595_v20 = vadd.f32 %v3404_v4, %v846_v62 }
 0x134   : > { %v2875_v2 = vpop.f32.mrf.mxu0 }
 0x135   : > { %1023 = vadd.xlane.f32.xlu0 %v3587_v0  ;;  %v3598_v28 = vadd.f32 %v2875_v2, %v3404_v4 }
 0x136   : > { %v856_v9 = vpop.f32.mrf.mxu0 }
 0x137   : > { %v3603_v44 = vadd.f32 %v3404_v4, %v856_v9 }
 0x138   : > { %v2878_v13 = vpop.f32.mrf.mxu0 }
 0x139   : > { %1029 = vadd.xlane.f32.xlu0 %v3590_v5  ;;  %v3606_v52 = vadd.f32 %v2878_v13, %v3404_v4 }
 0x13a   : > { %v866_v17 = vpop.f32.mrf.mxu0 }
 0x13b   : > { %v3611_v2 = vadd.f32 %v3404_v4, %v866_v17 }
 0x13c   : > { %v2881_v24 = vpop.f32.mrf.mxu0 }
 0x13d   : > { %1027 = vadd.xlane.f32.xlu0 %v3595_v20  ;;  %v3617_v9 = vadd.f32 %v2881_v24, %v3404_v4 }
 0x13e   : > { %v876_v32 = vpop.f32.mrf.mxu0 }
 0x140   : > { %v2884_v36 = vpop.f32.mrf.mxu0 }
 0x141   : > { %1033 = vadd.xlane.f32.xlu0 %v3598_v28 }
 0x142   : > { %v886_v40 = vpop.f32.mrf.mxu0 }
 0x144   : > { %v2887_v48 = vpop.f32.mrf.mxu0 }
 0x145   : > { %1031 = vadd.xlane.f32.xlu0 %v3603_v44 }
 0x146   : > { %v896_v58 = vpop.f32.mrf.mxu0 }
 0x148   : > { %v2890_v60 = vpop.f32.mrf.mxu0 }
 0x149   : > { %1037 = vadd.xlane.f32.xlu0 %v3606_v52 }
 0x14a   : > { %v906_v62 = vpop.f32.mrf.mxu0 }
 0x14b   : > { %v3614_v14 = vadd.f32 %v3404_v4, %v906_v62  ;;  %v3627_v62 = vadd.f32 %v3404_v4, %v876_v32 }
 0x14c   : > { %v2893_v16 = vpop.f32.mrf.mxu0 }
 0x14d   : > { %5075 = vst [vmem:[#allocation6_spill] sm:$0xff] %v3614_v14  ;;  %1051 = vadd.xlane.f32.xlu1 %v3614_v14  ;;  %1035 = vadd.xlane.f32.xlu0 %v3611_v2  ;;  %v3633_v14 = vadd.f32 %v2884_v36, %v3404_v4  ;;  %v3647_v36 = vadd.f32 %v3404_v4, %v896_v58 }
 0x14e   : > { %v916_v13 = vpop.f32.mrf.mxu0 }
 0x14f   : > { %v3622_v10 = vadd.f32 %v3404_v4, %v916_v13  ;;  %5078 = vst [vmem:[#allocation9_spill] sm:$0xff] %v3633_v14  ;;  %v3639_v13 = vadd.f32 %v3404_v4, %v886_v40  ;;  %5081 = vst [vmem:[#allocation12_spill] sm:$0xff] %v3647_v36  ;;  %v3655_v40 = vadd.f32 %v2890_v60, %v3404_v4 }
 0x150   : > { %v2896_v12 = vpop.f32.mrf.mxu0 }
 0x151   : > { %5076 = vst [vmem:[#allocation7_spill] sm:$0xff] %v3622_v10  ;;  %1055 = vadd.xlane.f32.xlu1 %v3622_v10  ;;  %1041 = vadd.xlane.f32.xlu0 %v3617_v9  ;;  %5079 = vst [vmem:[#allocation10_spill] sm:$0xff] %v3639_v13  ;;  %v3642_v10 = vadd.f32 %v2887_v48, %v3404_v4  ;;  %v3673_v60 = vadd.f32 %v2896_v12, %v3404_v4 }
 0x152   : > { %v926_v17 = vpop.f32.mrf.mxu0  ;;  %5083 = vst [vmem:[#allocation14_spill] sm:$0xff] %v3655_v40 }
 0x153   : > { %v3630_v24 = vadd.f32 %v3404_v4, %v926_v17  ;;  %5080 = vst [vmem:[#allocation11_spill] sm:$0xff] %v3642_v10  ;;  %5089 = vst [vmem:[#allocation20_spill] sm:$0xff] %v3673_v60 }
 0x155   : > { %5077 = vst [vmem:[#allocation8_spill] sm:$0xff] %v3630_v24  ;;  %1059 = vadd.xlane.f32.xlu1 %v3630_v24  ;;  %1039 = vadd.xlane.f32.xlu0 %v3627_v62 }
 0x159   : > { %1045 = vadd.xlane.f32.xlu0 %v3633_v14 }
 0x15d   : > { %1043 = vadd.xlane.f32.xlu0 %v3639_v13 }
 0x160   : > { %v938_v32 = vpop.xlane.xlu1 %937 }
 0x161   : > { %1049 = vadd.xlane.f32.xlu0 %v3642_v10  ;;  %v3658_v48 = vmul.f32 0.015625, %v938_v32  ;;  %v3663_v10 = vadd.f32 %v2893_v16, %v3404_v4 }
 0x162   : > { %v936_v17 = vpop.xlane.xlu0 %935 }
 0x163   : > { %5084 = vst [vmem:[#allocation15_spill] sm:$0xff] %v3658_v48  ;;  %5086 = vst [vmem:[#allocation17_spill] sm:$0xff] %v3663_v10 }
 0x164   : > { %v3650_v24 = vpop.xlane.xlu1 %941 }
 0x165   : > { %1047 = vadd.xlane.f32.xlu0 %v3647_v36  ;;  %5082 = vst [vmem:[#allocation13_spill] sm:$0xff] %v3650_v24  ;;  %v3670_v24 = vsub.f32 %v3407_v6, %v3658_v48 }
 0x166   : > { %v3652_v14 = vpop.xlane.xlu0 %939 }
 0x167   : > { %5088 = vst [vmem:[#allocation19_spill] sm:$0xff] %v3670_v24 }
 0x168   : > { %v3665_v58 = vpop.xlane.xlu1 %945 }
 0x169   : > { %1053 = vadd.xlane.f32.xlu0 %v3655_v40  ;;  %5087 = vst [vmem:[#allocation18_spill] sm:$0xff] %v3665_v58  ;;  %v3675_v40 = vmul.f32 0.015625, %v936_v17  ;;  %v1192_v58 = vmul.f32 %v3670_v24, %v3670_v24 }
 0x16a   : > { %v3660_v13 = vpop.xlane.xlu0 %943 }
 0x16b   : > { %5085 = vst [vmem:[#allocation16_spill] sm:$0xff] %v3660_v13  ;;  %v3694_v12 = vsub.f32 %v3410_v8, %v3675_v40 }
 0x16d   : > { %1057 = vadd.xlane.f32.xlu0 %v3663_v10  ;;  %5091 = vst [vmem:[#allocation22_spill] sm:$0xff] %v3694_v12 }
 0x16e   : > { %v950_v36 = vpop.xlane.xlu0 %949 }
 0x16f   : > { %v3677_v32 = vmul.f32 0.015625, %v950_v36 }
 0x170   : > { %v954_v13 = vpop.xlane.xlu1 %953 }
 0x171   : > { %1061 = vadd.xlane.f32.xlu0 %v3673_v60  ;;  %v3682_v16 = vsub.f32 %v3431_v19, %v3677_v32  ;;  %v3686_v6 = vmul.f32 0.015625, %v954_v13 }
 0x172   : > { %v948_v10 = vpop.xlane.xlu0 %947 }
 0x173   : > { %5090 = vst [vmem:[#allocation21_spill] sm:$0xff] %v3682_v16  ;;  %v3688_v48 = vmul.f32 0.015625, %v948_v10  ;;  %v1198_v4 = vmul.f32 %v3682_v16, %v3682_v16  ;;  %v1191_v10 = vmul.f32 %v3694_v12, %v3694_v12  ;;  %v3708_v8 = vsub.f32 %v3434_v21, %v3686_v6 }
 0x174   : > { %v952_v17 = vpop.xlane.xlu1 %951 }
 0x175   : > { %1257 = vadd.xlane.f32.xlu0 %v1192_v58  ;;  %1269 = vadd.xlane.f32.xlu1 %v1198_v4  ;;  %v3698_v19 = vsub.f32 %v3438_v23, %v3688_v48  ;;  %v3700_v24 = vmul.f32 0.015625, %v952_v17  ;;  %5093 = vst [vmem:[#allocation24_spill] sm:$0xff] %v3708_v8  ;;  %v1200_v23 = vmul.f32 %v3708_v8, %v3708_v8  ;;  %v2050_v8 = vld [vmem:[%s4972_s5 + $0x68] sm:$0xff] }
 0x176   : > { %v956_v36 = vpop.xlane.xlu0 %955 }
 0x177   : > { %5092 = vst [vmem:[#allocation23_spill] sm:$0xff] %v3698_v19  ;;  %v1197_v13 = vmul.f32 %v3698_v19, %v3698_v19  ;;  %v3716_v17 = vsub.f32 %v3442_v25, %v3700_v24  ;;  %v3718_v60 = vmul.f32 0.015625, %v956_v36  ;;  %v2051_v36 = vld [vmem:[%s4972_s5 + $0x70] sm:$0xff] }
 0x178   : > { %v958_v16 = vpop.xlane.xlu1 %957 }
 0x179   : > { %1255 = vadd.xlane.f32.xlu0 %v1191_v10  ;;  %1267 = vadd.xlane.f32.xlu1 %v1197_v13  ;;  %v3710_v4 = vmul.f32 0.015625, %v958_v16  ;;  %5095 = vst [vmem:[#allocation26_spill] sm:$0xff] %v3716_v17  ;;  %5096 = vst [vmem:[#allocation27_spill] sm:$0xff] %v3718_v60  ;;  %v1199_v21 = vmul.f32 %v3716_v17, %v3716_v17  ;;  %v2052_v13 = vld [vmem:[%s4972_s5 + $0x78] sm:$0xff]  ;;  %v3740_v17 = vsub.f32 %v3446_v27, %v3718_v60  ;;  %v2049_v27 = vld [vmem:[%s4972_s5 + $0x60] sm:$0xff] }
 0x17a   : > { %v960_v58 = vpop.xlane.xlu0 %959  ;;  %2897 = vmatprep.subr.mxu0 %v2052_v13  ;;  %3025 = vmatprep.subr.mxu1 %v2052_v13 }
 0x17b   : > { %5094 = vst [vmem:[#allocation25_spill] sm:$0xff] %v3710_v4  ;;  %v3724_v10 = vsub.f32 %v3450_v29, %v3710_v4  ;;  %2898 = vmatpush3.msra.mxu0 %v2052_v13  ;;  %5099 = vst [vmem:[#allocation30_spill] sm:$0xff] %v3740_v17  ;;  %3041 = vmatpush3.msra.mxu1 %v2052_v13  ;;  %v1201_v13 = vmul.f32 %v3740_v17, %v3740_v17 }
 0x17c   : > { %v962_v12 = vpop.xlane.xlu1 %961  ;;  %2899 = vmatprep.subr.mxu0 %v2051_v36  ;;  %3026 = vmatprep.subr.mxu1 %v2051_v36 }
 0x17d   : > { %1273 = vadd.xlane.f32.xlu1 %v1200_v23  ;;  %5097 = vst [vmem:[#allocation28_spill] sm:$0xff] %v3724_v10  ;;  %v3734_v23 = vmul.f32 0.015625, %v962_v12  ;;  %v1202_v29 = vmul.f32 %v3724_v10, %v3724_v10  ;;  %2900 = vmatpush3.msra.mxu0 %v2051_v36  ;;  %v3750_v10 = vmul.f32 0.015625, %v960_v58 }
 0x17e   : > { %v964_v19 = vpop.xlane.xlu0 %963  ;;  %3042 = vmatpush3.msra.mxu1 %v2051_v36  ;;  %2901 = vmatprep.subr.mxu0 %v2050_v8 }
 0x17f   : > { %5098 = vst [vmem:[#allocation29_spill] sm:$0xff] %v3734_v23  ;;  %3027 = vmatprep.subr.mxu1 %v2050_v8  ;;  %5100 = vst [vmem:[#allocation31_spill] sm:$0xff] %v3750_v10  ;;  %v3756_v60 = vsub.f32 %v3458_v33, %v3734_v23  ;;  %2902 = vmatpush3.msra.mxu0 %v2050_v8  ;;  %v2047_v33 = vld [vmem:[%s4972_s5 + $0x50] sm:$0xff]  ;;  %v3774_v4 = vsub.f32 %v3454_v31, %v3750_v10 }
 0x180   : > { %v966_v16 = vpop.xlane.xlu1 %965  ;;  %3043 = vmatpush3.msra.mxu1 %v2050_v8  ;;  %2903 = vmatprep.subr.mxu0 %v2049_v27 }
 0x181   : > { %1271 = vadd.xlane.f32.xlu1 %v1199_v21  ;;  %5101 = vst [vmem:[#allocation32_spill] sm:$0xff] %v3756_v60  ;;  %3028 = vmatprep.subr.mxu1 %v2049_v27  ;;  %v3766_v17 = vmul.f32 0.015625, %v966_v16  ;;  %v1204_v23 = vmul.f32 %v3756_v60, %v3756_v60  ;;  %5102 = vst [vmem:[#allocation33_spill] sm:$0xff] %v3774_v4  ;;  %v2046_v16 = vld [vmem:[%s4972_s5 + $0x48] sm:$0xff] }
 0x182   : > { %v3729_v25 = vpop.xlane.xlu0 %967  ;;  %2904 = vmatpush3.msra.mxu0 %v2049_v27  ;;  %3044 = vmatpush3.msra.mxu1 %v2049_v27 }
 0x184   : > { %v970_v21 = vpop.xlane.xlu1 %969 }
 0x185   : > { %1277 = vadd.xlane.f32.xlu1 %v1202_v29  ;;  %v2048_v29 = vld [vmem:[%s4972_s5 + $0x58] sm:$0xff] }
 0x186   : > { %v3745_v12 = vpop.xlane.xlu0 %971  ;;  %2905 = vmatprep.subr.mxu0 %v2048_v29  ;;  %3029 = vmatprep.subr.mxu1 %v2048_v29 }
 0x187   : > { %2906 = vmatpush3.msra.mxu0 %v2048_v29  ;;  %3045 = vmatpush3.msra.mxu1 %v2048_v29  ;;  %v1203_v29 = vmul.f32 %v3774_v4, %v3774_v4  ;;  %v3813_v4 = vmul.f32 0.015625, %v970_v21 }
 0x188   : > { %v3758_v36 = vpop.xlane.xlu1 %973  ;;  %2907 = vmatprep.subr.mxu0 %v2047_v33  ;;  %3030 = vmatprep.subr.mxu1 %v2047_v33 }
 0x189   : > { %1275 = vadd.xlane.f32.xlu1 %v1201_v13  ;;  %2908 = vmatpush3.msra.mxu0 %v2047_v33 }
 0x18a   : > { %v976_v58 = vpop.xlane.xlu0 %975  ;;  %3046 = vmatpush3.msra.mxu1 %v2047_v33  ;;  %2909 = vmatprep.subr.mxu0 %v2046_v16 }
 0x18b   : > { %v3768_v8 = vmul.f32 0.015625, %v976_v58  ;;  %v3785_v58 = vmul.f32 0.015625, %v964_v19  ;;  %3031 = vmatprep.subr.mxu1 %v2046_v16  ;;  %2910 = vmatpush3.msra.mxu0 %v2046_v16 }
 0x18c   : > { %v3776_v13 = vpop.xlane.xlu1 %977  ;;  %3047 = vmatpush3.msra.mxu1 %v2046_v16 }
 0x18d   : > { %1281 = vadd.xlane.f32.xlu1 %v1204_v23  ;;  %v3783_v27 = vsub.f32 %v3486_v47, %v3768_v8  ;;  %v3795_v23 = vsub.f32 %v3466_v37, %v3766_v17  ;;  %v2045_v47 = vld [vmem:[%s4972_s5 + $0x40] sm:$0xff]  ;;  %v2044_v37 = vld [vmem:[%s4972_s5 + $0x38] sm:$0xff] }
 0x18e   : > { %v980_v31 = vpop.xlane.xlu0 %979  ;;  %2911 = vmatprep.subr.mxu0 %v2045_v47  ;;  %3032 = vmatprep.subr.mxu1 %v2045_v47 }
 0x18f   : > { %5103 = vst [vmem:[#allocation34_spill] sm:$0xff] %v3783_v27  ;;  %v3787_v60 = vmul.f32 0.015625, %v980_v31  ;;  %v1211_v10 = vmul.f32 %v3783_v27, %v3783_v27  ;;  %5104 = vst [vmem:[#allocation35_spill] sm:$0xff] %v3795_v23  ;;  %v3811_v27 = vsub.f32 %v3462_v35, %v3785_v58  ;;  %2912 = vmatpush3.msra.mxu0 %v2045_v47  ;;  %3048 = vmatpush3.msra.mxu1 %v2045_v47  ;;  %v2043_v35 = vld [vmem:[%s4972_s5 + $0x30] sm:$0xff] }
 0x190   : > { %v3800_v19 = vpop.xlane.xlu1 %981  ;;  %2913 = vmatprep.subr.mxu0 %v2044_v37  ;;  %3033 = vmatprep.subr.mxu1 %v2044_v37 }
 0x191   : > { %1279 = vadd.xlane.f32.xlu1 %v1203_v29  ;;  %1295 = vadd.xlane.f32.xlu0 %v1211_v10  ;;  %v3804_v33 = vsub.f32 %v3494_v51, %v3787_v60  ;;  %5106 = vst [vmem:[#allocation37_spill] sm:$0xff] %v3811_v27  ;;  %v1206_v10 = vmul.f32 %v3795_v23, %v3795_v23  ;;  %v3829_v29 = vmul.f32 0.015625, %v3729_v25  ;;  %v2042_v25 = vld [vmem:[%s4972_s5 + $0x28] sm:$0xff] }
 0x192   : > { %v984_v31 = vpop.xlane.xlu0 %983  ;;  %2914 = vmatpush3.msra.mxu0 %v2044_v37  ;;  %3049 = vmatpush3.msra.mxu1 %v2044_v37  ;;  %v1205_v23 = vmul.f32 %v3811_v27, %v3811_v27  ;;  %v2041_v37 = vld [vmem:[%s4972_s5 + $0x20] sm:$0xff] }
 0x193   : > { %5105 = vst [vmem:[#allocation36_spill] sm:$0xff] %v3804_v33  ;;  %v3815_v16 = vmul.f32 0.015625, %v984_v31  ;;  %v1213_v51 = vmul.f32 %v3804_v33, %v3804_v33  ;;  %2915 = vmatprep.subr.mxu0 %v2043_v35  ;;  %3034 = vmatprep.subr.mxu1 %v2043_v35 }
 0x194   : > { %v3831_v31 = vpop.xlane.xlu1 %985  ;;  %2916 = vmatpush3.msra.mxu0 %v2043_v35  ;;  %3050 = vmatpush3.msra.mxu1 %v2043_v35 }
 0x195   : > { %1285 = vadd.xlane.f32.xlu1 %v1206_v10  ;;  %1299 = vadd.xlane.f32.xlu0 %v1213_v51  ;;  %v3826_v21 = vsub.f32 %v3502_v55, %v3815_v16  ;;  %v3841_v55 = vsub.f32 %v3474_v41, %v3813_v4  ;;  %v3855_v51 = vsub.f32 %v3470_v39, %v3829_v29  ;;  %v2040_v39 = vld [vmem:[%s4972_s5 + $0x18] sm:$0xff] }
 0x196   : > { %v988_v33 = vpop.xlane.xlu0 %987  ;;  %2917 = vmatprep.subr.mxu0 %v2042_v25  ;;  %3035 = vmatprep.subr.mxu1 %v2042_v25 }
 0x197   : > { %5107 = vst [vmem:[#allocation38_spill] sm:$0xff] %v3826_v21  ;;  %v3833_v47 = vmul.f32 0.015625, %v988_v33  ;;  %v1215_v10 = vmul.f32 %v3826_v21, %v3826_v21  ;;  %5108 = vst [vmem:[#allocation39_spill] sm:$0xff] %v3841_v55  ;;  %v3858_v21 = vmul.f32 0.015625, %v3758_v36  ;;  %2918 = vmatpush3.msra.mxu0 %v2042_v25  ;;  %3051 = vmatpush3.msra.mxu1 %v2042_v25 }
 0x198   : > { %5110 = vst [vmem:[#allocation41_spill] sm:$0xff] %v3855_v51  ;;  %2919 = vmatprep.subr.mxu0 %v2041_v37  ;;  %3036 = vmatprep.subr.mxu1 %v2041_v37 }
 0x199   : > { %1283 = vadd.xlane.f32.xlu1 %v1205_v23  ;;  %1303 = vadd.xlane.f32.xlu0 %v1215_v10  ;;  %v3848_v33 = vsub.f32 %v3510_v59, %v3833_v47  ;;  %v1208_v59 = vmul.f32 %v3841_v55, %v3841_v55  ;;  %v3866_v10 = vpop.xlane.xlu1 %989  ;;  %v1207_v55 = vmul.f32 %v3855_v51, %v3855_v51 }
 0x19a   : > { %v992_v41 = vpop.xlane.xlu0 %991  ;;  %2920 = vmatpush3.msra.mxu0 %v2041_v37  ;;  %3052 = vmatpush3.msra.mxu1 %v2041_v37 }
 0x19b   : > { %5109 = vst [vmem:[#allocation40_spill] sm:$0xff] %v3848_v33  ;;  %v3860_v23 = vmul.f32 0.015625, %v992_v41  ;;  %v1217_v35 = vmul.f32 %v3848_v33, %v3848_v33  ;;  %v3876_v41 = vmul.f32 0.015625, %v3745_v12  ;;  %2921 = vmatprep.subr.mxu0 %v2040_v39  ;;  %3037 = vmatprep.subr.mxu1 %v2040_v39 }
 0x19c   : > { %2922 = vmatpush3.msra.mxu0 %v2040_v39  ;;  %3053 = vmatpush3.msra.mxu1 %v2040_v39 }
 0x19d   : > { %1289 = vadd.xlane.f32.xlu1 %v1208_v59  ;;  %1307 = vadd.xlane.f32.xlu0 %v1217_v35  ;;  %v3873_v36 = vsub.f32 %v3518_v63, %v3860_v23  ;;  %v3886_v59 = vsub.f32 %v3482_v45, %v3858_v21  ;;  %v2039_v63 = vld [vmem:[%s4972_s5 + $0x10] sm:$0xff]  ;;  %v3899_v45 = vmul.f32 0.015625, %v3776_v13  ;;  %v994_v37 = vpop.xlane.xlu1 %993  ;;  %v2037_v13 = vld [vmem:[%s4972_s5] sm:$0xff] }
 0x19e   : > { %v996_v33 = vpop.xlane.xlu0 %995  ;;  %2923 = vmatprep.subr.mxu0 %v2039_v63  ;;  %3038 = vmatprep.subr.mxu1 %v2039_v63 }
 0x19f   : > { %5111 = vst [vmem:[#allocation42_spill] sm:$0xff] %v3873_v36  ;;  %v3878_v25 = vmul.f32 0.015625, %v996_v33  ;;  %v1219_v27 = vmul.f32 %v3873_v36, %v3873_v36  ;;  %5112 = vst [vmem:[#allocation43_spill] sm:$0xff] %v3886_v59  ;;  %v2038_v33 = vld [vmem:[%s4972_s5 + $0x8] sm:$0xff]  ;;  %v1210_v39 = vmul.f32 %v3886_v59, %v3886_v59  ;;  %2924 = vmatpush3.msra.mxu0 %v2039_v63  ;;  %3054 = vmatpush3.msra.mxu1 %v2039_v63 }
 0x1a0   : > { %2925 = vmatprep.subr.mxu0 %v2038_v33  ;;  %3039 = vmatprep.subr.mxu1 %v2038_v33 }
 0x1a1   : > { %v3893_v12 = vsub.f32 %v3526_v3, %v3878_v25  ;;  %1287 = vadd.xlane.f32.xlu1 %v1207_v55  ;;  %1311 = vadd.xlane.f32.xlu0 %v1219_v27  ;;  %v3909_v27 = vsub.f32 %v3478_v43, %v3876_v41  ;;  %v3923_v43 = vmul.f32 0.015625, %v3800_v19 }
 0x1a2   : > { %v1000_v35 = vpop.xlane.xlu0 %999  ;;  %2926 = vmatpush3.msra.mxu0 %v2038_v33  ;;  %3055 = vmatpush3.msra.mxu1 %v2038_v33 }
 0x1a3   : > { %5113 = vst [vmem:[#allocation44_spill] sm:$0xff] %v3893_v12  ;;  %v3901_v36 = vmul.f32 0.015625, %v1000_v35  ;;  %v1221_v3 = vmul.f32 %v3893_v12, %v3893_v12  ;;  %5114 = vst [vmem:[#allocation45_spill] sm:$0xff] %v3909_v27  ;;  %v3920_v12 = vsub.f32 %v3490_v49, %v3899_v45  ;;  %v1209_v59 = vmul.f32 %v3909_v27, %v3909_v27 }
 0x1a4   : > { %2927 = vmatprep.subr.mxu0 %v2037_v13  ;;  %3040 = vmatprep.subr.mxu1 %v2037_v13 }
 0x1a5   : > { %v3916_v55 = vsub.f32 %v3534_v11, %v3901_v36  ;;  %1293 = vadd.xlane.f32.xlu1 %v1210_v39  ;;  %1315 = vadd.xlane.f32.xlu0 %v1221_v3  ;;  %5116 = vst [vmem:[#allocation47_spill] sm:$0xff] %v3920_v12  ;;  %v998_v39 = vpop.xlane.xlu1 %997  ;;  %v1212_v33 = vmul.f32 %v3920_v12, %v3920_v12  ;;  %v3938_v3 = vmul.f32 0.015625, %v3831_v31 }
 0x1a6   : > { %v1004_v35 = vpop.xlane.xlu0 %1003  ;;  %2928 = vmatpush3.msra.mxu0 %v2037_v13  ;;  %3056 = vmatpush3.msra.mxu1 %v2037_v13  ;;  %v3946_v13 = vsub.f32 %v3498_v53, %v3923_v43 }
 0x1a7   : > { %5115 = vst [vmem:[#allocation46_spill] sm:$0xff] %v3916_v55  ;;  %v3925_v63 = vmul.f32 0.015625, %v1004_v35  ;;  %v1223_v11 = vmul.f32 %v3916_v55, %v3916_v55  ;;  %v3963_v12 = vsub.f32 %v3506_v57, %v3938_v3 }
 0x1a8   : > { %5118 = vst [vmem:[#allocation49_spill] sm:$0xff] %v3946_v13 }
 0x1a9   : > { %v3933_v49 = vsub.f32 %v3542_v18, %v3925_v63  ;;  %1291 = vadd.xlane.f32.xlu1 %v1209_v59  ;;  %1319 = vadd.xlane.f32.xlu0 %v1223_v11  ;;  %v3953_v59 = vmul.f32 0.015625, %v3866_v10  ;;  %v1002_v31 = vpop.xlane.xlu1 %1001  ;;  %5120 = vst [vmem:[#allocation51_spill] sm:$0xff] %v3963_v12 }
 0x1aa   : > { %v1008_v19 = vpop.xlane.xlu0 %1007 }
 0x1ab   : > { %5117 = vst [vmem:[#allocation48_spill] sm:$0xff] %v3933_v49  ;;  %v3940_v35 = vmul.f32 0.015625, %v1008_v19  ;;  %v1225_v55 = vmul.f32 %v3933_v49, %v3933_v49  ;;  %v1214_v49 = vmul.f32 %v3946_v13, %v3946_v13 }
 0x1ad   : > { %v3950_v18 = vsub.f32 %v3550_v26, %v3940_v35  ;;  %1297 = vadd.xlane.f32.xlu1 %v1212_v33  ;;  %1323 = vadd.xlane.f32.xlu0 %v1225_v55  ;;  %v3971_v55 = vsub.f32 %v3514_v61, %v3953_v59  ;;  %v3973_v33 = vmul.f32 0.015625, %v994_v37  ;;  %v1006_v13 = vpop.xlane.xlu1 %1005  ;;  %v3987_v37 = vmul.f32 0.015625, %v998_v39 }
 0x1ae   : > { %v1012_v11 = vpop.xlane.xlu0 %1011 }
 0x1af   : > { %5119 = vst [vmem:[#allocation50_spill] sm:$0xff] %v3950_v18  ;;  %v3955_v19 = vmul.f32 0.015625, %v1012_v11  ;;  %v1227_v53 = vmul.f32 %v3950_v18, %v3950_v18  ;;  %5122 = vst [vmem:[#allocation53_spill] sm:$0xff] %v3971_v55  ;;  %v1216_v18 = vmul.f32 %v3963_v12, %v3963_v12  ;;  %v1218_v61 = vmul.f32 %v3971_v55, %v3971_v55 }
 0x1b0   : > { %v4003_v39 = vsub.f32 %v3530_v7, %v3987_v37 }
 0x1b1   : > { %v3967_v26 = vsub.f32 %v3558_v34, %v3955_v19  ;;  %1301 = vadd.xlane.f32.xlu1 %v1214_v49  ;;  %1327 = vadd.xlane.f32.xlu0 %v1227_v53 }
 0x1b2   : > { %v1016_v10 = vpop.xlane.xlu0 %1015  ;;  %5126 = vst [vmem:[#allocation57_spill] sm:$0xff] %v4003_v39  ;;  %v1222_v7 = vmul.f32 %v4003_v39, %v4003_v39 }
 0x1b3   : > { %5121 = vst [vmem:[#allocation52_spill] sm:$0xff] %v3967_v26  ;;  %v3975_v11 = vmul.f32 0.015625, %v1016_v10  ;;  %v1229_v57 = vmul.f32 %v3967_v26, %v3967_v26  ;;  %v3995_v26 = vsub.f32 %v3522_v1, %v3973_v33 }
 0x1b5   : > { %v3983_v34 = vsub.f32 %v3566_v42, %v3975_v11  ;;  %1305 = vadd.xlane.f32.xlu1 %v1216_v18  ;;  %1331 = vadd.xlane.f32.xlu0 %v1229_v57  ;;  %5124 = vst [vmem:[#allocation55_spill] sm:$0xff] %v3995_v26  ;;  %v1010_v18 = vpop.xlane.xlu1 %1009 }
 0x1b6   : > { %v1020_v49 = vpop.xlane.xlu0 %1019 }
 0x1b7   : > { %5123 = vst [vmem:[#allocation54_spill] sm:$0xff] %v3983_v34  ;;  %v3989_v53 = vmul.f32 0.015625, %v1020_v49  ;;  %v1231_v10 = vmul.f32 %v3983_v34, %v3983_v34  ;;  %v4005_v49 = vmul.f32 0.015625, %v1002_v31  ;;  %v1220_v34 = vmul.f32 %v3995_v26, %v3995_v26 }
 0x1b9   : > { %v3999_v42 = vsub.f32 %v3574_v50, %v3989_v53  ;;  %1309 = vadd.xlane.f32.xlu1 %v1218_v61  ;;  %1335 = vadd.xlane.f32.xlu0 %v1231_v10  ;;  %v4013_v61 = vsub.f32 %v3538_v15, %v4005_v49  ;;  %v4015_v10 = vmul.f32 0.015625, %v1006_v13  ;;  %v1014_v31 = vpop.xlane.xlu1 %1013  ;;  %v4029_v15 = vmul.f32 0.015625, %v1010_v18 }
 0x1ba   : > { %v1026_v57 = vpop.xlane.xlu0 %1025 }
 0x1bb   : > { %5125 = vst [vmem:[#allocation56_spill] sm:$0xff] %v3999_v42  ;;  %v1233_v1 = vmul.f32 %v3999_v42, %v3999_v42  ;;  %5127 = vst [vmem:[#allocation58_spill] sm:$0xff] %v4013_v61  ;;  %v1224_v13 = vmul.f32 %v4013_v61, %v4013_v61 }
 0x1bd   : > { %1313 = vadd.xlane.f32.xlu1 %v1220_v34  ;;  %1339 = vadd.xlane.f32.xlu0 %v1233_v1  ;;  %v4027_v1 = vsub.f32 %v3546_v22, %v4015_v10  ;;  %v1018_v42 = vpop.xlane.xlu1 %1017 }
 0x1be   : > { %v1024_v50 = vpop.xlane.xlu0 %1023 }
 0x1bf   : > { %v4017_v55 = vmul.f32 0.015625, %v1024_v50  ;;  %5129 = vst [vmem:[#allocation60_spill] sm:$0xff] %v4027_v1  ;;  %v1226_v18 = vmul.f32 %v4027_v1, %v4027_v1 }
 0x1c1   : > { %v4023_v26 = vsub.f32 %v3587_v0, %v4017_v55  ;;  %1317 = vadd.xlane.f32.xlu1 %v1222_v7  ;;  %v4037_v0 = vsub.f32 %v3554_v30, %v4029_v15  ;;  %v4039_v7 = vmul.f32 0.015625, %v1014_v31  ;;  %v1022_v31 = vpop.xlane.xlu1 %1021 }
 0x1c2   : > { %v1030_v34 = vpop.xlane.xlu0 %1029 }
 0x1c3   : > { %5128 = vst [vmem:[#allocation59_spill] sm:$0xff] %v4023_v26  ;;  %v1235_v50 = vmul.f32 %v4023_v26, %v4023_v26  ;;  %5130 = vst [vmem:[#allocation61_spill] sm:$0xff] %v4037_v0  ;;  %v4053_v26 = vmul.f32 0.015625, %v1018_v42  ;;  %v1228_v30 = vmul.f32 %v4037_v0, %v4037_v0 }
 0x1c5   : > { %1321 = vadd.xlane.f32.xlu1 %v1224_v13  ;;  %1343 = vadd.xlane.f32.xlu0 %v1235_v50  ;;  %v4051_v50 = vsub.f32 %v3562_v38, %v4039_v7 }
 0x1c6   : > { %v1028_v39 = vpop.xlane.xlu0 %1027 }
 0x1c7   : > { %v4041_v22 = vmul.f32 0.015625, %v1028_v39  ;;  %5132 = vst [vmem:[#allocation63_spill] sm:$0xff] %v4051_v50  ;;  %v1230_v42 = vmul.f32 %v4051_v50, %v4051_v50 }
 0x1c9   : > { %v4047_v61 = vsub.f32 %v3595_v20, %v4041_v22  ;;  %1325 = vadd.xlane.f32.xlu1 %v1226_v18  ;;  %v4061_v20 = vsub.f32 %v3570_v46, %v4053_v26  ;;  %v4063_v18 = vmul.f32 0.015625, %v1022_v31 }
 0x1ca   : > { %v1034_v13 = vpop.xlane.xlu0 %1033 }
 0x1cb   : > { %5131 = vst [vmem:[#allocation62_spill] sm:$0xff] %v4047_v61  ;;  %v1237_v39 = vmul.f32 %v4047_v61, %v4047_v61  ;;  %5133 = vst [vmem:[#allocation64_spill] sm:$0xff] %v4061_v20  ;;  %v1232_v46 = vmul.f32 %v4061_v20, %v4061_v20 }
 0x1cd   : > { %1329 = vadd.xlane.f32.xlu1 %v1228_v30  ;;  %1347 = vadd.xlane.f32.xlu0 %v1237_v39  ;;  %v4075_v30 = vsub.f32 %v3578_v54, %v4063_v18  ;;  %v4077_v39 = vmul.f32 0.015625, %v1026_v57 }
 0x1ce   : > { %v1032_v1 = vpop.xlane.xlu0 %1031 }
 0x1cf   : > { %v4065_v38 = vmul.f32 0.015625, %v1032_v1  ;;  %5136 = vst [vmem:[#allocation67_spill] sm:$0xff] %v4075_v30  ;;  %v1234_v54 = vmul.f32 %v4075_v30, %v4075_v30 }
 0x1d1   : > { %5134 = vst [vmem:[#allocation65_spill] sm:$0xff] %v4065_v38  ;;  %v4071_v0 = vsub.f32 %v3603_v44, %v4065_v38  ;;  %1333 = vadd.xlane.f32.xlu1 %v1230_v42  ;;  %v4085_v44 = vsub.f32 %v3581_v56, %v4077_v39  ;;  %v4087_v42 = vmul.f32 0.015625, %v1030_v34 }
 0x1d2   : > { %v1038_v61 = vpop.xlane.xlu0 %1037 }
 0x1d3   : > { %5135 = vst [vmem:[#allocation66_spill] sm:$0xff] %v4071_v0  ;;  %v1239_v1 = vmul.f32 %v4071_v0, %v4071_v0  ;;  %5137 = vst [vmem:[#allocation68_spill] sm:$0xff] %v4085_v44  ;;  %v1236_v56 = vmul.f32 %v4085_v44, %v4085_v44 }
 0x1d5   : > { %1337 = vadd.xlane.f32.xlu1 %v1232_v46  ;;  %1351 = vadd.xlane.f32.xlu0 %v1239_v1  ;;  %v4099_v46 = vsub.f32 %v3590_v5, %v4087_v42  ;;  %v4101_v1 = vmul.f32 0.015625, %v1034_v13 }
 0x1d6   : > { %v1036_v31 = vpop.xlane.xlu0 %1035 }
 0x1d7   : > { %v4089_v50 = vmul.f32 0.015625, %v1036_v31  ;;  %5140 = vst [vmem:[#allocation71_spill] sm:$0xff] %v4099_v46  ;;  %v1238_v5 = vmul.f32 %v4099_v46, %v4099_v46 }
 0x1d9   : > { %5138 = vst [vmem:[#allocation69_spill] sm:$0xff] %v4089_v50  ;;  %v4095_v57 = vsub.f32 %v3611_v2, %v4089_v50  ;;  %1341 = vadd.xlane.f32.xlu1 %v1234_v54  ;;  %v4109_v2 = vsub.f32 %v3598_v28, %v4101_v1  ;;  %v4111_v54 = vmul.f32 0.015625, %v1038_v61  ;;  %v5180_v50 = vld [vmem:[#allocation4_spill] sm:$0xff] }
 0x1da   : > { %v1042_v0 = vpop.xlane.xlu0 %1041 }
 0x1db   : > { %5139 = vst [vmem:[#allocation70_spill] sm:$0xff] %v4095_v57  ;;  %v1241_v34 = vmul.f32 %v4095_v57, %v4095_v57  ;;  %5141 = vst [vmem:[#allocation72_spill] sm:$0xff] %v4109_v2  ;;  %v1240_v28 = vmul.f32 %v4109_v2, %v4109_v2 }
 0x1dc   : > { %5142 = vst [vmem:[#allocation73_spill] sm:$0xff] %v4111_v54 }
 0x1dd   : > { %1345 = vadd.xlane.f32.xlu1 %v1236_v56  ;;  %1355 = vadd.xlane.f32.xlu0 %v1241_v34  ;;  %v4123_v56 = vsub.f32 %v3606_v52, %v4111_v54  ;;  %v4125_v34 = vmul.f32 0.015625, %v1042_v0  ;;  %v5150_v0 = vld [vmem:[#allocation10_spill] sm:$0xff] }
 0x1de   : > { %v1040_v31 = vpop.xlane.xlu0 %1039 }
 0x1df   : > { %v4113_v30 = vmul.f32 0.015625, %v1040_v31  ;;  %5145 = vst [vmem:[#allocation76_spill] sm:$0xff] %v4123_v56  ;;  %5146 = vst [vmem:[#allocation77_spill] sm:$0xff] %v4125_v34  ;;  %v1242_v52 = vmul.f32 %v4123_v56, %v4123_v56  ;;  %v5155_v56 = vld [vmem:[#allocation11_spill] sm:$0xff] }
 0x1e1   : > { %5143 = vst [vmem:[#allocation74_spill] sm:$0xff] %v4113_v30  ;;  %v4119_v13 = vsub.f32 %v3627_v62, %v4113_v30  ;;  %1349 = vadd.xlane.f32.xlu1 %v1238_v5  ;;  %v4133_v62 = vsub.f32 %v3617_v9, %v4125_v34 }
 0x1e2   : > { %v1046_v57 = vpop.xlane.xlu0 %1045 }
 0x1e3   : > { %5144 = vst [vmem:[#allocation75_spill] sm:$0xff] %v4119_v13  ;;  %v1243_v61 = vmul.f32 %v4119_v13, %v4119_v13  ;;  %5147 = vst [vmem:[#allocation78_spill] sm:$0xff] %v4133_v62  ;;  %v4135_v5 = vmul.f32 0.015625, %v1046_v57  ;;  %v1244_v9 = vmul.f32 %v4133_v62, %v4133_v62  ;;  %v5158_v62 = vld [vmem:[#allocation12_spill] sm:$0xff] }
 0x1e5   : > { %1353 = vadd.xlane.f32.xlu1 %v1240_v28  ;;  %1359 = vadd.xlane.f32.xlu0 %v1243_v61  ;;  %5148 = vst [vmem:[#allocation79_spill] sm:$0xff] %v4135_v5  ;;  %v5152_v28 = vld [vmem:[#allocation9_spill] sm:$0xff] }
 0x1e6   : > { %v1044_v31 = vpop.xlane.xlu0 %1043  ;;  %v4147_v61 = vsub.f32 %v5152_v28, %v4135_v5 }
 0x1e7   : > { %v4137_v46 = vmul.f32 0.015625, %v1044_v31  ;;  %v4156_v31 = vmul.f32 0.015625, %v3652_v14  ;;  %v5161_v14 = vld [vmem:[#allocation3_spill] sm:$0xff] }
 0x1e8   : > { %5153 = vst [vmem:[#allocation9_spill] sm:$0xff] %v4147_v61 }
 0x1e9   : > { %5149 = vst [vmem:[#allocation80_spill] sm:$0xff] %v4137_v46  ;;  %v4143_v2 = vsub.f32 %v5150_v0, %v4137_v46  ;;  %1357 = vadd.xlane.f32.xlu1 %v1242_v52  ;;  %v1052_v0 = vpop.xlane.xlu1 %1051 }
 0x1ea   : > { %v1050_v13 = vpop.xlane.xlu0 %1049 }
 0x1eb   : > { %5151 = vst [vmem:[#allocation10_spill] sm:$0xff] %v4143_v2  ;;  %v4149_v44 = vmul.f32 0.015625, %v1050_v13  ;;  %v1245_v57 = vmul.f32 %v4143_v2, %v4143_v2  ;;  %v1246_v13 = vmul.f32 %v4147_v61, %v4147_v61  ;;  %v4175_v2 = vsub.f32 %v5161_v14, %v4156_v31  ;;  %v5167_v14 = vld [vmem:[#allocation2_spill] sm:$0xff] }
 0x1ed   : > { %5154 = vst [vmem:[#allocation81_spill] sm:$0xff] %v4149_v44  ;;  %1361 = vadd.xlane.f32.xlu1 %v1244_v9  ;;  %1363 = vadd.xlane.f32.xlu0 %v1245_v57  ;;  %v4160_v20 = vsub.f32 %v5155_v56, %v4149_v44  ;;  %v5160_v9 = vld [vmem:[#allocation13_spill] sm:$0xff]  ;;  %v4177_v56 = vmul.f32 0.015625, %v1052_v0  ;;  %v5169_v0 = vld [vmem:[#allocation16_spill] sm:$0xff] }
 0x1ee   : > { %v1048_v52 = vpop.xlane.xlu0 %1047  ;;  %v4171_v57 = vmul.f32 0.015625, %v5160_v9  ;;  %5162 = vst [vmem:[#allocation13_spill] sm:$0xff] %v4175_v2 }
 0x1ef   : > { %5156 = vst [vmem:[#allocation11_spill] sm:$0xff] %v4160_v20  ;;  %v4162_v28 = vmul.f32 0.015625, %v1048_v52  ;;  %5163 = vst [vmem:[#allocation3_spill] sm:$0xff] %v4177_v56  ;;  %v1248_v61 = vmul.f32 %v4160_v20, %v4160_v20  ;;  %v5170_v20 = vld [vmem:[#allocation6_spill] sm:$0xff] }
 0x1f0   : > { %v4191_v44 = vsub.f32 %v5167_v14, %v4171_v57  ;;  %v4198_v12 = vsub.f32 %v5170_v20, %v4177_v56  ;;  %v5173_v14 = vld [vmem:[#allocation15_spill] sm:$0xff] }
 0x1f1   : > { %5157 = vst [vmem:[#allocation82_spill] sm:$0xff] %v4162_v28  ;;  %v4168_v46 = vsub.f32 %v5158_v62, %v4162_v28  ;;  %1365 = vadd.xlane.f32.xlu1 %v1246_v13  ;;  %v1056_v28 = vpop.xlane.xlu1 %1055  ;;  %v5165_v13 = vld [vmem:[#allocation14_spill] sm:$0xff] }
 0x1f2   : > { %v1054_v5 = vpop.xlane.xlu0 %1053  ;;  %5168 = vst [vmem:[#allocation2_spill] sm:$0xff] %v4191_v44  ;;  %5171 = vst [vmem:[#allocation16_spill] sm:$0xff] %v4198_v12  ;;  %v4213_v20 = vmul.f32 0.015625, %v1056_v28 }
 0x1f3   : > { %5159 = vst [vmem:[#allocation12_spill] sm:$0xff] %v4168_v46  ;;  %v4179_v52 = vmul.f32 0.015625, %v1054_v5  ;;  %v1247_v62 = vmul.f32 %v4168_v46, %v4168_v46  ;;  %v4194_v5 = vmul.f32 0.015625, %v5169_v0  ;;  %v1384_v0 = vmul.f32 %v5173_v14, %v5173_v14 }
 0x1f4   : > { %5175 = vst [vmem:[#allocation15_spill] sm:$0xff] %v4213_v20  ;;  %v1249_v14 = vmul.f32 %v4198_v12, %v4198_v12 }
 0x1f5   : > { %5164 = vst [vmem:[#allocation83_spill] sm:$0xff] %v4179_v52  ;;  %v4187_v9 = vsub.f32 %v5165_v13, %v4179_v52  ;;  %1369 = vadd.xlane.f32.xlu1 %v1248_v61  ;;  %1367 = vadd.xlane.f32.xlu0 %v1247_v62  ;;  %v1193_v13 = vmul.f32 %v4175_v2, %v4175_v2  ;;  %v5174_v52 = vld [vmem:[#allocation18_spill] sm:$0xff]  ;;  %v5176_v2 = vld [vmem:[#allocation5_spill] sm:$0xff] }
 0x1f6   : > { %v1058_v30 = vpop.xlane.xlu0 %1057  ;;  %v1390_v62 = vmul.f32 %v3677_v32, %v3677_v32  ;;  %v4211_v27 = vmul.f32 0.015625, %v5174_v52  ;;  %v4217_v51 = vsub.f32 %v5176_v2, %v4194_v5  ;;  %v1194_v32 = vmul.f32 %v4191_v44, %v4191_v44 }
 0x1f7   : > { %5166 = vst [vmem:[#allocation14_spill] sm:$0xff] %v4187_v9  ;;  %v4200_v46 = vmul.f32 0.015625, %v1058_v30  ;;  %v1250_v61 = vmul.f32 %v4187_v9, %v4187_v9  ;;  %v1060_v30 = vpop.xlane.xlu1 %1059  ;;  %v1448_v52 = vmul.f32 64.0, %v1384_v0  ;;  %v1389_v9 = vmul.f32 %v3688_v48, %v3688_v48 }
 0x1f8   : > { %5177 = vst [vmem:[#allocation18_spill] sm:$0xff] %v4217_v51  ;;  %v1454_v28 = vmul.f32 64.0, %v1390_v62  ;;  %v1383_v2 = vmul.f32 %v3675_v40, %v3675_v40  ;;  %v4239_v56 = vmul.f32 0.015625, %v1060_v30  ;;  %v1195_v48 = vmul.f32 %v4217_v51, %v4217_v51 }
 0x1f9   : > { %5172 = vst [vmem:[#allocation6_spill] sm:$0xff] %v4200_v46  ;;  %1259 = vadd.xlane.f32.xlu0 %v1193_v13  ;;  %1373 = vadd.xlane.f32.xlu1 %v1250_v61  ;;  %v5178_v13 = vld [vmem:[#allocation17_spill] sm:$0xff] }
 0x1fa   : > { %v1062_v34 = vpop.xlane.xlu0 %1061  ;;  %v4221_v61 = vsub.f32 %v5178_v13, %v4200_v46  ;;  %v4233_v13 = vsub.f32 %v5180_v50, %v4211_v27  ;;  %v5182_v46 = vld [vmem:[#allocation7_spill] sm:$0xff]  ;;  %v1392_v50 = vmul.f32 %v3686_v6, %v3686_v6  ;;  %v1447_v30 = vmul.f32 64.0, %v1383_v2 }
 0x1fb   : > { %v4237_v44 = vsub.f32 %v5182_v46, %v4213_v20  ;;  %v1453_v46 = vmul.f32 64.0, %v1389_v9  ;;  %v5184_v20 = vld [vmem:[#allocation8_spill] sm:$0xff] }
 0x1fc   : > { %5179 = vst [vmem:[#allocation5_spill] sm:$0xff] %v4221_v61  ;;  %5181 = vst [vmem:[#allocation17_spill] sm:$0xff] %v4233_v13  ;;  %v1252_v40 = vmul.f32 %v4221_v61, %v4221_v61  ;;  %v4249_v38 = vsub.f32 %v5184_v20, %v4239_v56  ;;  %v1456_v9 = vmul.f32 64.0, %v1392_v50 }
 0x1fd   : > { %1261 = vadd.xlane.f32.xlu0 %v1194_v32  ;;  %1371 = vadd.xlane.f32.xlu1 %v1249_v14  ;;  %5183 = vst [vmem:[#allocation4_spill] sm:$0xff] %v4237_v44  ;;  %v1251_v6 = vmul.f32 %v4237_v44, %v4237_v44  ;;  %v5186_v44 = vld [vmem:[#allocation20_spill] sm:$0xff] }
 0x1fe   : > { %v1270_v32 = vpop.xlane.xlu1 %1269  ;;  %v1258_v14 = vpop.xlane.xlu0 %1257  ;;  %5185 = vst [vmem:[#allocation7_spill] sm:$0xff] %v4249_v38 }
 0x1ff   : > { %v1518_v62 = vsub.f32 %v1270_v32, %v1454_v28  ;;  %v1512_v0 = vsub.f32 %v1258_v14, %v1448_v52  ;;  %v4251_v28 = vmul.f32 0.015625, %v1062_v34  ;;  %v1196_v14 = vmul.f32 %v4233_v13, %v4233_v13 }
 0x200   : > { %v1391_v34 = vmul.f32 %v3700_v24, %v3700_v24  ;;  %v1253_v13 = vmul.f32 %v4249_v38, %v4249_v38  ;;  %v5188_v24 = vld [vmem:[#allocation25_spill] sm:$0xff] }
 0x201   : > { %v1582_v12 = vmul.f32 0.015625, %v1518_v62  ;;  %v1576_v54 = vmul.f32 0.015625, %v1512_v0  ;;  %1263 = vadd.xlane.f32.xlu0 %v1195_v48  ;;  %1377 = vadd.xlane.f32.xlu1 %v1252_v40 }
 0x202   : > { %v1268_v52 = vpop.xlane.xlu1 %1267  ;;  %v1256_v32 = vpop.xlane.xlu0 %1255 }
 0x203   : > { %v1646_v62 = vadd.f32 1e-05, %v1582_v12  ;;  %v1640_v0 = vadd.f32 1e-05, %v1576_v54  ;;  %v1517_v48 = vsub.f32 %v1268_v52, %v1453_v46  ;;  %v1511_v40 = vsub.f32 %v1256_v32, %v1447_v30 }
 0x204   : > { %v4263_v12 = vsub.f32 %v5186_v44, %v4251_v28  ;;  %v1386_v30 = vmul.f32 %v4171_v57, %v4171_v57  ;;  %v1455_v32 = vmul.f32 64.0, %v1391_v34  ;;  %v1388_v44 = vmul.f32 %v4211_v27, %v4211_v27  ;;  %v5191_v34 = vld [vmem:[#allocation31_spill] sm:$0xff] }
 0x205   : > { %3065 = vrsqrt.f32 %v1646_v62  ;;  %v1581_v2 = vmul.f32 0.015625, %v1517_v48  ;;  %v1575_v51 = vmul.f32 0.015625, %v1511_v40  ;;  %1265 = vadd.xlane.f32.xlu0 %v1196_v14  ;;  %1375 = vadd.xlane.f32.xlu1 %v1251_v6  ;;  %v1394_v14 = vmul.f32 %v5188_v24, %v5188_v24  ;;  %v5189_v48 = vld [vmem:[#allocation27_spill] sm:$0xff] }
 0x206   : > { %3067 = vrsqrt.f32 %v1640_v0  ;;  %v1274_v20 = vpop.xlane.xlu1 %1273  ;;  %5187 = vst [vmem:[#allocation8_spill] sm:$0xff] %v4263_v12  ;;  %v1385_v62 = vmul.f32 %v4156_v31, %v4156_v31  ;;  %v1254_v57 = vmul.f32 %v4263_v12, %v4263_v12  ;;  %v1393_v40 = vmul.f32 %v5189_v48, %v5189_v48 }
 0x207   : > { %v1645_v54 = vadd.f32 1e-05, %v1581_v2  ;;  %v1639_v46 = vadd.f32 1e-05, %v1575_v51  ;;  %v1520_v50 = vsub.f32 %v1274_v20, %v1456_v9  ;;  %v5190_v9 = vld [vmem:[#allocation29_spill] sm:$0xff]  ;;  %v1395_v31 = vmul.f32 %v5191_v34, %v5191_v34 }
 0x208   : > { %v1396_v2 = vmul.f32 %v5190_v9, %v5190_v9  ;;  %v1397_v27 = vmul.f32 %v3785_v58, %v3785_v58  ;;  %v4293_v24 = vmul.f32 64.0, %v1388_v44  ;;  %v1400_v58 = vmul.f32 %v3813_v4, %v3813_v4 }
 0x209   : > { %3069 = vrsqrt.f32 %v1645_v54  ;;  %v1584_v52 = vmul.f32 0.015625, %v1520_v50  ;;  %1379 = vadd.xlane.f32.xlu1 %v1253_v13  ;;  %v1387_v13 = vmul.f32 %v4194_v5, %v4194_v5  ;;  %v1458_v54 = vmul.f32 64.0, %v1394_v14 }
 0x20a   : > { %3071 = vrsqrt.f32 %v1639_v46  ;;  %v1272_v6 = vpop.xlane.xlu1 %1271  ;;  %v4285_v46 = vmul.f32 64.0, %v1386_v30  ;;  %v1398_v5 = vmul.f32 %v3766_v17, %v3766_v17  ;;  %v1457_v30 = vmul.f32 64.0, %v1393_v40 }
 0x20b   : > { %v1648_v51 = vadd.f32 1e-05, %v1584_v52  ;;  %v1519_v0 = vsub.f32 %v1272_v6, %v1455_v32  ;;  %v1399_v52 = vmul.f32 %v3829_v29, %v3829_v29  ;;  %v4291_v32 = vmul.f32 64.0, %v1385_v62 }
 0x20c   : > { %v1460_v14 = vmul.f32 64.0, %v1396_v2  ;;  %v1402_v29 = vmul.f32 %v3858_v21, %v3858_v21  ;;  %v1401_v62 = vmul.f32 %v3876_v41, %v3876_v41  ;;  %v1403_v4 = vmul.f32 %v3768_v8, %v3768_v8  ;;  %v4318_v21 = vld [vmem:[%s4970_s3] ss:$0 sm:$0xff]  ;;  %v5192_v41 = vld [vmem:[#allocation21_spill] sm:$0xff]  ;;  %v5193_v8 = vld [vmem:[#allocation19_spill] sm:$0xff] }
 0x20d   : > { %3073 = vrsqrt.f32 %v1648_v51  ;;  %v1583_v20 = vmul.f32 0.015625, %v1519_v0  ;;  %1381 = vadd.xlane.f32.xlu1 %v1254_v57  ;;  %v4297_v51 = vmul.f32 64.0, %v1387_v13  ;;  %v4299_v0 = vmul.f32 64.0, %v1395_v31 }
 0x20e   : > { %v1278_v50 = vpop.xlane.xlu1 %1277  ;;  %v4301_v57 = vmul.f32 64.0, %v1397_v27  ;;  %v4309_v13 = vmul.f32 64.0, %v1398_v5  ;;  %v4311_v40 = vmul.f32 64.0, %v1399_v52  ;;  %v1404_v2 = vmul.f32 %v3899_v45, %v3899_v45 }
 0x20f   : > { %v1647_v6 = vadd.f32 1e-05, %v1583_v20  ;;  %v1522_v48 = vsub.f32 %v1278_v50, %v1458_v54  ;;  %v4321_v54 = vmul.f32 64.0, %v1400_v58  ;;  %v1405_v5 = vmul.f32 %v3787_v60, %v3787_v60 }
 0x210   : > { %v1407_v45 = vmul.f32 %v3815_v16, %v3815_v16  ;;  %v1406_v52 = vmul.f32 %v3923_v43, %v3923_v43  ;;  %v1408_v60 = vmul.f32 %v3938_v3, %v3938_v3 }
 0x211   : > { %3075 = vrsqrt.f32 %v1647_v6  ;;  %v1586_v17 = vmul.f32 0.015625, %v1522_v48  ;;  %v4330_v48 = vmul.f32 64.0, %v1402_v29  ;;  %v4344_v29 = vld [vmem:[%s4971_s4] ss:$0 sm:$0xff] }
 0x212   : > { %v3066_v44 = vpop.eup %3065  ;;  %v1276_v9 = vpop.xlane.xlu1 %1275  ;;  %v4353_v12 = vmul.f32 64.0, %v1406_v52 }
 0x213   : > { %v3068_v34 = vpop.eup %3067  ;;  %v1650_v31 = vadd.f32 1e-05, %v1586_v17  ;;  %v1521_v27 = vsub.f32 %v1276_v9, %v1457_v30  ;;  %v1774_v20 = vmul.f32 %v3066_v44, %v5192_v41  ;;  %v4332_v30 = vmul.f32 64.0, %v1401_v62  ;;  %v5194_v62 = vld [vmem:[#allocation23_spill] sm:$0xff] }
 0x214   : > { %v1768_v50 = vmul.f32 %v3068_v34, %v5193_v8  ;;  %v4334_v44 = vmul.f32 64.0, %v1403_v4  ;;  %v4337_v34 = vmul.f32 64.0, %v1404_v2  ;;  %v4351_v8 = vmul.f32 64.0, %v1407_v45 }
 0x215   : > { %3077 = vrsqrt.f32 %v1650_v31  ;;  %v1585_v6 = vmul.f32 0.015625, %v1521_v27  ;;  %v1845_v9 = vmul.f32 %v4318_v21, %v1774_v20  ;;  %v4348_v27 = vmul.f32 64.0, %v1405_v5  ;;  %v5195_v20 = vld [vmem:[#allocation22_spill] sm:$0xff] }
 0x216   : > { %v3070_v17 = vpop.eup %3069  ;;  %v1282_v58 = vpop.xlane.xlu1 %1281  ;;  %v1839_v4 = vmul.f32 %v4318_v21, %v1768_v50  ;;  %v1410_v45 = vmul.f32 %v3953_v59, %v3953_v59  ;;  %v1413_v59 = vmul.f32 %v3878_v25, %v3878_v25 }
 0x217   : > { %v3072_v16 = vpop.eup %3071  ;;  %v1649_v41 = vadd.f32 1e-05, %v1585_v6  ;;  %v1524_v43 = vsub.f32 %v1282_v58, %v1460_v14  ;;  %v1773_v31 = vmul.f32 %v3070_v17, %v5194_v62  ;;  %v1409_v6 = vmul.f32 %v3833_v47, %v3833_v47 }
 0x218   : > { %v1767_v2 = vmul.f32 %v3072_v16, %v5195_v20  ;;  %v1916_v5 = vadd.f32 %v4344_v29, %v1845_v9  ;;  %v4362_v16 = vmul.f32 64.0, %v1408_v60  ;;  %v1910_v47 = vadd.f32 %v4344_v29, %v1839_v4 }
 0x219   : > { %3079 = vrsqrt.f32 %v1649_v41  ;;  %v1588_v3 = vmul.f32 0.015625, %v1524_v43  ;;  %v1844_v14 = vmul.f32 %v4318_v21, %v1773_v31  ;;  %v5196_v31 = vld [vmem:[#allocation24_spill] sm:$0xff]  ;;  %v1412_v9 = vmul.f32 %v3973_v33, %v3973_v33 }
 0x21a   : > { %v3074_v58 = vpop.eup %3073  ;;  %v1280_v38 = vpop.xlane.xlu1 %1279  ;;  %v1838_v50 = vmul.f32 %v4318_v21, %v1767_v2  ;;  %v1411_v2 = vmul.f32 %v3860_v23, %v3860_v23  ;;  %v1414_v4 = vmul.f32 %v3987_v37, %v3987_v37  ;;  %v1980_v23 = vmax.f32 %v1916_v5, 0.0 }
 0x21b   : > { %v4358_v17 = vpop.xlane.xlu0 %1295  ;;  %v1652_v52 = vadd.f32 1e-05, %v1588_v3  ;;  %v1523_v41 = vsub.f32 %v1280_v38, %v4299_v0  ;;  %v1915_v43 = vadd.f32 %v4344_v29, %v1844_v14  ;;  %v1776_v20 = vmul.f32 %v3074_v58, %v5196_v31 }
 0x21c   : > { %v1909_v62 = vadd.f32 %v4344_v29, %v1838_v50  ;;  %v1415_v3 = vmul.f32 %v3901_v36, %v3901_v36  ;;  %v1974_v61 = vmax.f32 %v1910_v47, 0.0  ;;  %v4388_v36 = vmul.f32 64.0, %v1410_v45 }
 0x21d   : > { %3081 = vrsqrt.f32 %v1652_v52  ;;  %v1587_v60 = vmul.f32 0.015625, %v1523_v41  ;;  %v1979_v38 = vmax.f32 %v1915_v43, 0.0  ;;  %v1847_v25 = vmul.f32 %v4318_v21, %v1776_v20  ;;  %v5197_v41 = vld [vmem:[#allocation26_spill] sm:$0xff] }
 0x21e   : > { %v3076_v0 = vpop.eup %3075  ;;  %v1286_v14 = vpop.xlane.xlu1 %1285  ;;  %v1973_v50 = vmax.f32 %v1909_v62, 0.0  ;;  %v4383_v52 = vmul.f32 64.0, %v1409_v6  ;;  %v4386_v43 = vmul.f32 64.0, %v1411_v2  ;;  %v1416_v5 = vmul.f32 %v4005_v49, %v4005_v49 }
 0x21f   : > { %v1300_v58 = vpop.xlane.xlu0 %1299  ;;  %v1651_v31 = vadd.f32 1e-05, %v1587_v60  ;;  %v1526_v33 = vsub.f32 %v1286_v14, %v4309_v13  ;;  %2938 = vmatprep.mubr.f32.mxu1 %v1979_v38  ;;  %v1775_v37 = vmul.f32 %v3076_v0, %v5197_v41  ;;  %v4392_v13 = vmul.f32 64.0, %v1412_v9 }
 0x220   : > { %2929 = vmatprep.mubr.f32.mxu0 %v1973_v50  ;;  %2939 = vmatmul.mubr.f32.vlgmr.msra.gmra.mxu1 %v1980_v23  ;;  %v4397_v38 = vmul.f32 64.0, %v1413_v59  ;;  %v4399_v2 = vmul.f32 64.0, %v1415_v3  ;;  %v4401_v45 = vmul.f32 64.0, %v1414_v4  ;;  %v1417_v49 = vmul.f32 %v3925_v63, %v3925_v63  ;;  %v5198_v3 = vld [vmem:[#allocation28_spill] sm:$0xff] }
 0x221   : > { %3083 = vrsqrt.f32 %v1651_v31  ;;  %v1590_v62 = vmul.f32 0.015625, %v1526_v33  ;;  %2930 = vmatmul.mubr.f32.vlgmr.msra.gmra.mxu0 %v1974_v61  ;;  %v1846_v6 = vmul.f32 %v4318_v21, %v1775_v37  ;;  %v1918_v9 = vadd.f32 %v4344_v29, %v1847_v25 }
 0x222   : > { %v3078_v47 = vpop.eup %3077  ;;  %v1284_v20 = vpop.xlane.xlu1 %1283  ;;  %v1418_v14 = vmul.f32 %v4015_v10, %v4015_v10  ;;  %v1419_v50 = vmul.f32 %v3940_v35, %v3940_v35  ;;  %v1420_v4 = vmul.f32 %v4029_v15, %v4029_v15  ;;  %v4415_v31 = vmul.f32 64.0, %v1416_v5 }
 0x223   : > { %v4394_v60 = vpop.xlane.xlu0 %1303  ;;  %v1654_v0 = vadd.f32 1e-05, %v1590_v62  ;;  %v1525_v61 = vsub.f32 %v1284_v20, %v4301_v57  ;;  %v1917_v59 = vadd.f32 %v4344_v29, %v1846_v6  ;;  %v1778_v23 = vmul.f32 %v3078_v47, %v5198_v3  ;;  %v5199_v20 = vld [vmem:[#allocation30_spill] sm:$0xff] }
 0x224   : > { %v1421_v33 = vmul.f32 %v3955_v19, %v3955_v19  ;;  %v1531_v10 = vsub.f32 %v4358_v17, %v4334_v44  ;;  %v1533_v35 = vsub.f32 %v1300_v58, %v4348_v27  ;;  %v1982_v47 = vmax.f32 %v1918_v9, 0.0 }
 0x225   : > { %3085 = vrsqrt.f32 %v1654_v0  ;;  %v1589_v63 = vmul.f32 0.015625, %v1525_v61  ;;  %v1981_v37 = vmax.f32 %v1917_v59, 0.0  ;;  %v1849_v5 = vmul.f32 %v4318_v21, %v1778_v23 }
 0x226   : > { %v3080_v57 = vpop.eup %3079  ;;  %v1290_v25 = vpop.xlane.xlu1 %1289  ;;  %v4427_v0 = vmul.f32 64.0, %v1417_v49  ;;  %v4429_v19 = vmul.f32 64.0, %v1419_v50  ;;  %v4431_v44 = vmul.f32 64.0, %v1418_v14  ;;  %v1422_v27 = vmul.f32 %v4039_v7, %v4039_v7 }
 0x227   : > { %v4422_v41 = vpop.xlane.xlu0 %1307  ;;  %v1653_v62 = vadd.f32 1e-05, %v1589_v63  ;;  %v1528_v15 = vsub.f32 %v1290_v25, %v4321_v54  ;;  %2941 = vmatprep.mubr.f32.mxu1 %v1981_v37  ;;  %v1777_v6 = vmul.f32 %v3080_v57, %v5199_v20  ;;  %v4435_v58 = vmul.f32 64.0, %v1420_v4 }
 0x228   : > { %2942 = vmatmul.mubr.f32.gmra.mxu1 %v1982_v47  ;;  %v1423_v61 = vmul.f32 %v3975_v11, %v3975_v11  ;;  %v1595_v9 = vmul.f32 0.015625, %v1531_v10  ;;  %v1597_v59 = vmul.f32 0.015625, %v1533_v35  ;;  %v1920_v7 = vadd.f32 %v4344_v29, %v1849_v5  ;;  %v5200_v10 = vld [vmem:[#allocation32_spill] sm:$0xff] }
 0x229   : > { %3087 = vrsqrt.f32 %v1653_v62  ;;  %v1592_v17 = vmul.f32 0.015625, %v1528_v15  ;;  %v1848_v14 = vmul.f32 %v4318_v21, %v1777_v6  ;;  %v4444_v63 = vmul.f32 64.0, %v1421_v33 }
 0x22a   : > { %v3082_v54 = vpop.eup %3081  ;;  %v1288_v49 = vpop.xlane.xlu1 %1287  ;;  %v1424_v4 = vmul.f32 %v4053_v26, %v4053_v26  ;;  %v1535_v11 = vsub.f32 %v4394_v60, %v4351_v8  ;;  %v1425_v25 = vmul.f32 %v3989_v53, %v3989_v53  ;;  %v1659_v33 = vadd.f32 1e-05, %v1595_v9 }
 0x22b   : > { %v4439_v3 = vpop.xlane.xlu0 %1311  ;;  %v1656_v50 = vadd.f32 1e-05, %v1592_v17  ;;  %v1527_v23 = vsub.f32 %v1288_v49, %v4311_v40  ;;  %v1919_v57 = vadd.f32 %v4344_v29, %v1848_v14  ;;  %v1780_v35 = vmul.f32 %v3082_v54, %v5200_v10  ;;  %v5201_v54 = vld [vmem:[#allocation33_spill] sm:$0xff] }
 0x22c   : > { %v4454_v40 = vmul.f32 64.0, %v1422_v27  ;;  %v1661_v15 = vadd.f32 1e-05, %v1597_v59  ;;  %v4458_v20 = vmul.f32 64.0, %v1423_v61  ;;  %v1984_v6 = vmax.f32 %v1920_v7, 0.0 }
 0x22d   : > { %3089 = vrsqrt.f32 %v1656_v50  ;;  %v1591_v37 = vmul.f32 0.015625, %v1527_v23  ;;  %v1983_v26 = vmax.f32 %v1919_v57, 0.0  ;;  %v1851_v17 = vmul.f32 %v4318_v21, %v1780_v35 }
 0x22e   : > { %v3084_v62 = vpop.eup %3083  ;;  %v1294_v47 = vpop.xlane.xlu1 %1293  ;;  %v1426_v53 = vmul.f32 %v4063_v18, %v4063_v18  ;;  %v1599_v27 = vmul.f32 0.015625, %v1535_v11  ;;  %v4465_v59 = vmul.f32 64.0, %v1424_v4  ;;  %v1428_v49 = vmul.f32 %v4077_v39, %v4077_v39 }
 0x22f   : > { %v4456_v5 = vpop.xlane.xlu0 %1315  ;;  %v1655_v8 = vadd.f32 1e-05, %v1591_v37  ;;  %v1530_v60 = vsub.f32 %v1294_v47, %v4330_v48  ;;  %2944 = vmatprep.mubr.f32.mxu1 %v1983_v26  ;;  %v1779_v9 = vmul.f32 %v3084_v62, %v5201_v54  ;;  %v4469_v14 = vmul.f32 64.0, %v1425_v25  ;;  %v5202_v25 = vld [vmem:[#allocation35_spill] sm:$0xff] }
 0x230   : > { %2945 = vmatmul.mubr.f32.gmra.mxu1 %v1984_v6  ;;  %v1427_v50 = vmul.f32 %v4017_v55, %v4017_v55  ;;  %v1537_v18 = vsub.f32 %v4422_v41, %v4383_v52  ;;  %v1922_v57 = vadd.f32 %v4344_v29, %v1851_v17  ;;  %v1663_v10 = vadd.f32 1e-05, %v1599_v27  ;;  %v5203_v17 = vld [vmem:[#allocation37_spill] sm:$0xff] }
 0x231   : > { %3091 = vrsqrt.f32 %v1655_v8  ;;  %v1594_v61 = vmul.f32 0.015625, %v1530_v60  ;;  %v1850_v4 = vmul.f32 %v4318_v21, %v1779_v9  ;;  %v1539_v35 = vsub.f32 %v4439_v3, %v4386_v43 }
 0x232   : > { %v3086_v48 = vpop.eup %3085  ;;  %3093 = vrsqrt.f32 %v1659_v33  ;;  %v1292_v23 = vpop.xlane.xlu1 %1291  ;;  %v1430_v52 = vmul.f32 %v4087_v42, %v4087_v42  ;;  %v1429_v41 = vmul.f32 %v4041_v22, %v4041_v22  ;;  %v4488_v26 = vmul.f32 64.0, %v1426_v53 }
 0x233   : > { %v4475_v7 = vpop.xlane.xlu0 %1319  ;;  %3095 = vrsqrt.f32 %v1661_v15  ;;  %v1658_v39 = vadd.f32 1e-05, %v1594_v61  ;;  %v1529_v11 = vsub.f32 %v1292_v23, %v4332_v30  ;;  %v1921_v55 = vadd.f32 %v4344_v29, %v1850_v4 }
 0x234   : > { %v1782_v37 = vmul.f32 %v3086_v48, %v5202_v25  ;;  %v1601_v30 = vmul.f32 0.015625, %v1537_v18  ;;  %v4490_v8 = vmul.f32 64.0, %v1428_v49  ;;  %v1986_v6 = vmax.f32 %v1922_v57, 0.0 }
 0x235   : > { %3097 = vrsqrt.f32 %v1658_v39  ;;  %v1593_v62 = vmul.f32 0.015625, %v1529_v11  ;;  %v1985_v47 = vmax.f32 %v1921_v55, 0.0  ;;  %v1603_v22 = vmul.f32 0.015625, %v1539_v35  ;;  %v5205_v35 = vld [vmem:[#allocation73_spill] sm:$0xff] }
 0x236   : > { %v3088_v33 = vpop.eup %3087  ;;  %v1298_v15 = vpop.xlane.xlu1 %1297  ;;  %v1853_v42 = vmul.f32 %v4318_v21, %v1782_v37  ;;  %3099 = vrsqrt.f32 %v1663_v10  ;;  %v4497_v54 = vmul.f32 64.0, %v1427_v50  ;;  %v4499_v9 = vmul.f32 64.0, %v1429_v41  ;;  %v5204_v50 = vld [vmem:[#allocation65_spill] sm:$0xff]  ;;  %v5206_v37 = vld [vmem:[#allocation39_spill] sm:$0xff] }
 0x237   : > { %v1657_v43 = vadd.f32 1e-05, %v1593_v62  ;;  %v1532_v3 = vsub.f32 %v1298_v15, %v4337_v34  ;;  %v4493_v60 = vpop.xlane.xlu0 %1323  ;;  %2947 = vmatprep.mubr.f32.mxu1 %v1985_v47  ;;  %v1781_v27 = vmul.f32 %v3088_v33, %v5203_v17  ;;  %v4501_v49 = vmul.f32 64.0, %v1430_v52  ;;  %v5208_v41 = vld [vmem:[#allocation69_spill] sm:$0xff] }
 0x238   : > { %2948 = vmatmul.mubr.f32.gmra.mxu1 %v1986_v6  ;;  %v1432_v61 = vmul.f32 %v4101_v1, %v4101_v1  ;;  %v1665_v48 = vadd.f32 1e-05, %v1601_v30  ;;  %v1541_v18 = vsub.f32 %v4456_v5, %v4397_v38  ;;  %v1431_v39 = vmul.f32 %v5204_v50, %v5204_v50  ;;  %v5207_v38 = vld [vmem:[#allocation3_spill] sm:$0xff] }
 0x239   : > { %3101 = vrsqrt.f32 %v1657_v43  ;;  %v1596_v53 = vmul.f32 0.015625, %v1532_v3  ;;  %v1852_v4 = vmul.f32 %v4318_v21, %v1781_v27  ;;  %v1924_v10 = vadd.f32 %v4344_v29, %v1853_v42 }
 0x23a   : > { %v3090_v34 = vpop.eup %3089  ;;  %v1302_v23 = vpop.xlane.xlu1 %1301  ;;  %v1434_v55 = vmul.f32 %v5205_v35, %v5205_v35  ;;  %v1667_v25 = vadd.f32 1e-05, %v1603_v22  ;;  %v1441_v5 = vmul.f32 %v5207_v38, %v5207_v38  ;;  %v1433_v62 = vmul.f32 %v5208_v41, %v5208_v41  ;;  %v5211_v41 = vld [vmem:[#allocation34_spill] sm:$0xff] }
 0x23b   : > { %v1660_v11 = vadd.f32 1e-05, %v1596_v53  ;;  %v1534_v57 = vsub.f32 %v1302_v23, %v4353_v12  ;;  %v1923_v1 = vadd.f32 %v4344_v29, %v1852_v4  ;;  %v1784_v52 = vmul.f32 %v3090_v34, %v5206_v37  ;;  %v4520_v30 = vpop.xlane.xlu0 %1327  ;;  %v5209_v34 = vld [vmem:[#allocation41_spill] sm:$0xff] }
 0x23c   : > { %v1605_v15 = vmul.f32 0.015625, %v1541_v18  ;;  %v1543_v47 = vsub.f32 %v4475_v7, %v4399_v2  ;;  %v1988_v17 = vmax.f32 %v1924_v10, 0.0  ;;  %v4527_v4 = vmul.f32 64.0, %v1431_v39 }
 0x23d   : > { %3103 = vrsqrt.f32 %v1660_v11  ;;  %v1598_v33 = vmul.f32 0.015625, %v1534_v57  ;;  %v1987_v3 = vmax.f32 %v1923_v1, 0.0  ;;  %v1855_v27 = vmul.f32 %v4318_v21, %v1784_v52  ;;  %v5210_v52 = vld [vmem:[#allocation43_spill] sm:$0xff] }
 0x23e   : > { %v3092_v12 = vpop.eup %3091  ;;  %3105 = vrsqrt.f32 %v1665_v48  ;;  %v1306_v43 = vpop.xlane.xlu1 %1305  ;;  %v4529_v48 = vmul.f32 64.0, %v1432_v61  ;;  %v4531_v7 = vmul.f32 64.0, %v1433_v62  ;;  %v4533_v18 = vmul.f32 64.0, %v1434_v55 }
 0x23f   : > { %v3094_v6 = vpop.eup %3093  ;;  %v1662_v42 = vadd.f32 1e-05, %v1598_v33  ;;  %v1536_v22 = vsub.f32 %v1306_v43, %v4362_v16  ;;  %3107 = vrsqrt.f32 %v1667_v25  ;;  %2950 = vmatprep.mubr.f32.mxu1 %v1987_v3  ;;  %v1783_v23 = vmul.f32 %v3092_v12, %v5209_v34  ;;  %v1332_v25 = vpop.xlane.xlu0 %1331  ;;  %v5212_v33 = vld [vmem:[#allocation36_spill] sm:$0xff] }
 0x240   : > { %v3096_v53 = vpop.eup %3095  ;;  %2951 = vmatmul.mubr.f32.gmra.mxu1 %v1988_v17  ;;  %v1669_v50 = vadd.f32 1e-05, %v1605_v15  ;;  %v1607_v11 = vmul.f32 0.015625, %v1543_v47  ;;  %v1545_v57 = vsub.f32 %v4493_v60, %v4427_v0  ;;  %v1926_v1 = vadd.f32 %v4344_v29, %v1855_v27  ;;  %v5213_v60 = vld [vmem:[#allocation15_spill] sm:$0xff]  ;;  %v5214_v47 = vld [vmem:[#allocation77_spill] sm:$0xff] }
 0x241   : > { %3109 = vrsqrt.f32 %v1662_v42  ;;  %v1600_v2 = vmul.f32 0.015625, %v1536_v22  ;;  %v1854_v35 = vmul.f32 %v4318_v21, %v1783_v23  ;;  %v4540_v37 = vmul.f32 64.0, %v1441_v5 }
 0x242   : > { %v3098_v16 = vpop.eup %3097  ;;  %v1310_v10 = vpop.xlane.xlu1 %1309  ;;  %v1787_v62 = vmul.f32 %v3094_v6, %v5211_v41  ;;  %v1789_v12 = vmul.f32 %v3096_v53, %v5212_v33  ;;  %v4548_v15 = vmul.f32 %v5213_v60, %v5213_v60  ;;  %v1671_v3 = vadd.f32 1e-05, %v1607_v11  ;;  %v5217_v33 = vld [vmem:[#allocation47_spill] sm:$0xff] }
 0x243   : > { %v1664_v39 = vadd.f32 1e-05, %v1600_v2  ;;  %v1538_v61 = vsub.f32 %v1310_v10, %v4388_v36  ;;  %v1925_v55 = vadd.f32 %v4344_v29, %v1854_v35  ;;  %v1786_v38 = vmul.f32 %v3098_v16, %v5210_v52  ;;  %v3100_v0 = vpop.eup %3099  ;;  %v5215_v2 = vld [vmem:[#allocation45_spill] sm:$0xff]  ;;  %v1336_v11 = vpop.xlane.xlu0 %1335  ;;  %v5216_v35 = vld [vmem:[#allocation38_spill] sm:$0xff] }
 0x244   : > { %v1436_v36 = vmul.f32 %v5214_v47, %v5214_v47  ;;  %v1609_v42 = vmul.f32 0.015625, %v1545_v57  ;;  %v1990_v53 = vmax.f32 %v1926_v1, 0.0  ;;  %v1547_v23 = vsub.f32 %v4520_v30, %v4429_v19 }
 0x245   : > { %3111 = vrsqrt.f32 %v1664_v39  ;;  %v1602_v43 = vmul.f32 0.015625, %v1538_v61  ;;  %v1989_v17 = vmax.f32 %v1925_v55, 0.0  ;;  %v1857_v34 = vmul.f32 %v4318_v21, %v1786_v38 }
 0x246   : > { %v3102_v5 = vpop.eup %3101  ;;  %3113 = vrsqrt.f32 %v1669_v50  ;;  %v1314_v22 = vpop.xlane.xlu1 %1313  ;;  %v1858_v10 = vmul.f32 %v4318_v21, %v1787_v62  ;;  %v1860_v50 = vmul.f32 %v4318_v21, %v1789_v12  ;;  %v1791_v39 = vmul.f32 %v3100_v0, %v5216_v35 }
 0x247   : > { %v1666_v27 = vadd.f32 1e-05, %v1602_v43  ;;  %v1540_v6 = vsub.f32 %v1314_v22, %v4392_v13  ;;  %2953 = vmatprep.mubr.f32.mxu1 %v1989_v17  ;;  %v1785_v16 = vmul.f32 %v3102_v5, %v5215_v2  ;;  %v4560_v13 = vmul.f32 64.0, %v1436_v36  ;;  %v5218_v17 = vld [vmem:[#allocation40_spill] sm:$0xff] }
 0x248   : > { %2954 = vmatmul.mubr.f32.gmra.mxu1 %v1990_v53  ;;  %v1673_v1 = vadd.f32 1e-05, %v1609_v42  ;;  %v1549_v19 = vsub.f32 %v1332_v25, %v4444_v63  ;;  %v1928_v62 = vadd.f32 %v4344_v29, %v1857_v34  ;;  %v1611_v60 = vmul.f32 0.015625, %v1547_v23 }
 0x249   : > { %3115 = vrsqrt.f32 %v1666_v27  ;;  %v1604_v57 = vmul.f32 0.015625, %v1540_v6  ;;  %v1856_v55 = vmul.f32 %v4318_v21, %v1785_v16  ;;  %v1929_v47 = vadd.f32 %v4344_v29, %v1858_v10  ;;  %v1340_v6 = vpop.xlane.xlu0 %1339 }
 0x24a   : > { %v3104_v61 = vpop.eup %3103  ;;  %3117 = vrsqrt.f32 %v1671_v3  ;;  %v1318_v30 = vpop.xlane.xlu1 %1317  ;;  %v1931_v36 = vadd.f32 %v4344_v29, %v1860_v50  ;;  %v1862_v5 = vmul.f32 %v4318_v21, %v1791_v39  ;;  %v1992_v23 = vmax.f32 %v1928_v62, 0.0 }
 0x24b   : > { %v3106_v52 = vpop.eup %3105  ;;  %v1668_v38 = vadd.f32 1e-05, %v1604_v57  ;;  %v1542_v41 = vsub.f32 %v1318_v30, %v4401_v45  ;;  %v1788_v12 = vmul.f32 %v3104_v61, %v5217_v33  ;;  %v1927_v0 = vadd.f32 %v4344_v29, %v1856_v55  ;;  %v5219_v57 = vld [vmem:[#allocation49_spill] sm:$0xff] }
 0x24c   : > { %v3108_v43 = vpop.eup %3107  ;;  %v1613_v45 = vmul.f32 0.015625, %v1549_v19  ;;  %v1793_v27 = vmul.f32 %v3106_v52, %v5218_v17  ;;  %v1675_v16 = vadd.f32 1e-05, %v1611_v60  ;;  %v1551_v10 = vsub.f32 %v1336_v11, %v4458_v20  ;;  %v5221_v60 = vld [vmem:[#allocation51_spill] sm:$0xff] }
 0x24d   : > { %3119 = vrsqrt.f32 %v1668_v38  ;;  %v1606_v63 = vmul.f32 0.015625, %v1542_v41  ;;  %v1859_v25 = vmul.f32 %v4318_v21, %v1788_v12  ;;  %v1991_v22 = vmax.f32 %v1927_v0, 0.0 }
 0x24e   : > { %v3110_v3 = vpop.eup %3109  ;;  %3121 = vrsqrt.f32 %v1673_v1  ;;  %v1322_v42 = vpop.xlane.xlu1 %1321  ;;  %v1993_v50 = vmax.f32 %v1929_v47, 0.0  ;;  %v5220_v1 = vld [vmem:[#allocation42_spill] sm:$0xff]  ;;  %v1677_v55 = vadd.f32 1e-05, %v1613_v45  ;;  %v1995_v52 = vmax.f32 %v1931_v36, 0.0 }
 0x24f   : > { %v1670_v53 = vadd.f32 1e-05, %v1606_v63  ;;  %v1544_v34 = vsub.f32 %v1322_v42, %v4415_v31  ;;  %v1930_v2 = vadd.f32 %v4344_v29, %v1859_v25  ;;  %2956 = vmatprep.mubr.f32.mxu1 %v1991_v22  ;;  %v1790_v35 = vmul.f32 %v3110_v3, %v5219_v57  ;;  %v1344_v62 = vpop.xlane.xlu0 %1343  ;;  %v5222_v22 = vld [vmem:[#allocation44_spill] sm:$0xff] }
 0x250   : > { %2957 = vmatmul.mubr.f32.gmra.mxu1 %v1992_v23  ;;  %v1795_v19 = vmul.f32 %v3108_v43, %v5220_v1  ;;  %v1864_v41 = vmul.f32 %v4318_v21, %v1793_v27  ;;  %v1933_v12 = vadd.f32 %v4344_v29, %v1862_v5  ;;  %v1615_v47 = vmul.f32 0.015625, %v1551_v10 }
 0x251   : > { %3123 = vrsqrt.f32 %v1670_v53  ;;  %v1608_v39 = vmul.f32 0.015625, %v1544_v34  ;;  %v1994_v61 = vmax.f32 %v1930_v2, 0.0  ;;  %2959 = vmatprep.mubr.f32.mxu1 %v1993_v50  ;;  %v1861_v38 = vmul.f32 %v4318_v21, %v1790_v35  ;;  %v5223_v50 = vld [vmem:[#allocation53_spill] sm:$0xff] }
 0x252   : > { %v3112_v30 = vpop.eup %3111  ;;  %v1326_v31 = vpop.xlane.xlu1 %1325  ;;  %3125 = vrsqrt.f32 %v1675_v16  ;;  %v1553_v43 = vsub.f32 %v1340_v6, %v4469_v14  ;;  %v1866_v3 = vmul.f32 %v4318_v21, %v1795_v19  ;;  %v1935_v42 = vadd.f32 %v4344_v29, %v1864_v41  ;;  %v5224_v41 = vld [vmem:[#allocation55_spill] sm:$0xff] }
 0x253   : > { %v3114_v20 = vpop.eup %3113  ;;  %v1672_v11 = vadd.f32 1e-05, %v1608_v39  ;;  %v1546_v33 = vsub.f32 %v1326_v31, %v4431_v44  ;;  %v1792_v0 = vmul.f32 %v3112_v30, %v5221_v60  ;;  %v1932_v63 = vadd.f32 %v4344_v29, %v1861_v38 }
 0x254   : > { %2960 = vmatmul.mubr.f32.gmra.mxu1 %v1994_v61  ;;  %v1797_v17 = vmul.f32 %v3114_v20, %v5222_v22  ;;  %v1997_v34 = vmax.f32 %v1933_v12, 0.0  ;;  %v1679_v2 = vadd.f32 1e-05, %v1615_v47  ;;  %v1617_v16 = vmul.f32 0.015625, %v1553_v43 }
 0x255   : > { %3127 = vrsqrt.f32 %v1672_v11  ;;  %v1610_v36 = vmul.f32 0.015625, %v1546_v33  ;;  %v1863_v25 = vmul.f32 %v4318_v21, %v1792_v0  ;;  %2962 = vmatprep.mubr.f32.mxu1 %v1995_v52  ;;  %v1996_v5 = vmax.f32 %v1932_v63, 0.0  ;;  %v5225_v11 = vld [vmem:[#allocation46_spill] sm:$0xff] }
 0x256   : > { %v3116_v45 = vpop.eup %3115  ;;  %3129 = vrsqrt.f32 %v1677_v55  ;;  %v1330_v44 = vpop.xlane.xlu1 %1329  ;;  %v1555_v10 = vsub.f32 %v1344_v62, %v4497_v54  ;;  %v1937_v61 = vadd.f32 %v4344_v29, %v1866_v3  ;;  %v1999_v30 = vmax.f32 %v1935_v42, 0.0 }
 0x257   : > { %v3118_v27 = vpop.eup %3117  ;;  %v1674_v14 = vadd.f32 1e-05, %v1610_v36  ;;  %v1548_v6 = vsub.f32 %v1330_v44, %v4435_v58  ;;  %v1348_v53 = vpop.xlane.xlu0 %1347  ;;  %v1934_v23 = vadd.f32 %v4344_v29, %v1863_v25  ;;  %v1794_v57 = vmul.f32 %v3116_v45, %v5223_v50  ;;  %v5226_v45 = vld [vmem:[#allocation48_spill] sm:$0xff] }
 0x258   : > { %2963 = vmatmul.mubr.f32.gmra.mxu1 %v1996_v5  ;;  %v1557_v19 = vsub.f32 %v1348_v53, %v4499_v9  ;;  %v1868_v31 = vmul.f32 %v4318_v21, %v1797_v17  ;;  %v1799_v62 = vmul.f32 %v3118_v27, %v5225_v11  ;;  %v1681_v33 = vadd.f32 1e-05, %v1617_v16 }
 0x259   : > { %3131 = vrsqrt.f32 %v1674_v14  ;;  %v1612_v35 = vmul.f32 0.015625, %v1548_v6  ;;  %v1998_v39 = vmax.f32 %v1934_v23, 0.0  ;;  %2965 = vmatprep.mubr.f32.mxu1 %v1997_v34  ;;  %v1865_v55 = vmul.f32 %v4318_v21, %v1794_v57  ;;  %v5227_v6 = vld [vmem:[#allocation57_spill] sm:$0xff] }
 0x25a   : > { %v3120_v1 = vpop.eup %3119  ;;  %v1334_v58 = vpop.xlane.xlu1 %1333  ;;  %3133 = vrsqrt.f32 %v1679_v2  ;;  %v1619_v12 = vmul.f32 0.015625, %v1555_v10  ;;  %v2001_v0 = vmax.f32 %v1937_v61, 0.0  ;;  %v1621_v63 = vmul.f32 0.015625, %v1557_v19 }
 0x25b   : > { %v3122_v52 = vpop.eup %3121  ;;  %v1676_v54 = vadd.f32 1e-05, %v1612_v35  ;;  %v1550_v38 = vsub.f32 %v1334_v58, %v4454_v40  ;;  %v1796_v20 = vmul.f32 %v3120_v1, %v5224_v41  ;;  %v1936_v9 = vadd.f32 %v4344_v29, %v1865_v55  ;;  %v5228_v58 = vld [vmem:[#allocation58_spill] sm:$0xff] }
 0x25c   : > { %2966 = vmatmul.mubr.f32.gmra.mxu1 %v1998_v39  ;;  %v1939_v3 = vadd.f32 %v4344_v29, %v1868_v31  ;;  %v1801_v44 = vmul.f32 %v3122_v52, %v5226_v45  ;;  %v1870_v17 = vmul.f32 %v4318_v21, %v1799_v62  ;;  %v1683_v27 = vadd.f32 1e-05, %v1619_v12  ;;  %v5229_v31 = vld [vmem:[#allocation50_spill] sm:$0xff]  ;;  %v5231_v12 = vld [vmem:[#allocation52_spill] sm:$0xff] }
 0x25d   : > { %3135 = vrsqrt.f32 %v1676_v54  ;;  %v1614_v60 = vmul.f32 0.015625, %v1550_v38  ;;  %v1867_v47 = vmul.f32 %v4318_v21, %v1796_v20  ;;  %2968 = vmatprep.mubr.f32.mxu1 %v1999_v30  ;;  %v2000_v25 = vmax.f32 %v1936_v9, 0.0  ;;  %v5230_v54 = vld [vmem:[#allocation74_spill] sm:$0xff] }
 0x25e   : > { %v3124_v43 = vpop.eup %3123  ;;  %v1338_v36 = vpop.xlane.xlu1 %1337  ;;  %3137 = vrsqrt.f32 %v1681_v33  ;;  %v4610_v16 = vmul.f32 64.0, %v4548_v15  ;;  %v2003_v57 = vmax.f32 %v1939_v3, 0.0  ;;  %v1872_v39 = vmul.f32 %v4318_v21, %v1801_v44 }
 0x25f   : > { %v1352_v40 = vpop.xlane.xlu0 %1351  ;;  %v1678_v5 = vadd.f32 1e-05, %v1614_v60  ;;  %v1552_v42 = vsub.f32 %v1338_v36, %v4465_v59  ;;  %v1938_v22 = vadd.f32 %v4344_v29, %v1867_v47  ;;  %v1798_v53 = vmul.f32 %v3124_v43, %v5227_v6  ;;  %v3126_v34 = vpop.eup %3125 }
 0x260   : > { %v1559_v14 = vsub.f32 %v1352_v40, %v4527_v4  ;;  %2969 = vmatmul.mubr.f32.gmra.mxu1 %v2000_v25  ;;  %v1685_v59 = vadd.f32 1e-05, %v1621_v63  ;;  %v1941_v19 = vadd.f32 %v4344_v29, %v1870_v17  ;;  %v1803_v52 = vmul.f32 %v3126_v34, %v5229_v31  ;;  %v5232_v63 = vld [vmem:[#allocation60_spill] sm:$0xff] }
 0x261   : > { %3139 = vrsqrt.f32 %v1678_v5  ;;  %v1616_v23 = vmul.f32 0.015625, %v1552_v42  ;;  %v2002_v2 = vmax.f32 %v1938_v22, 0.0  ;;  %2971 = vmatprep.mubr.f32.mxu1 %v2001_v0  ;;  %v1869_v35 = vmul.f32 %v4318_v21, %v1798_v53 }
 0x262   : > { %v3128_v10 = vpop.eup %3127  ;;  %v1342_v50 = vpop.xlane.xlu1 %1341  ;;  %3141 = vrsqrt.f32 %v1683_v27  ;;  %v1623_v15 = vmul.f32 0.015625, %v1559_v14  ;;  %v1435_v38 = vmul.f32 %v5230_v54, %v5230_v54  ;;  %v1943_v33 = vadd.f32 %v4344_v29, %v1872_v39 }
 0x263   : > { %v3130_v4 = vpop.eup %3129  ;;  %v1680_v61 = vadd.f32 1e-05, %v1616_v23  ;;  %v1554_v1 = vsub.f32 %v1342_v50, %v4488_v26  ;;  %v1800_v30 = vmul.f32 %v3128_v10, %v5228_v58  ;;  %v1940_v55 = vadd.f32 %v4344_v29, %v1869_v35  ;;  %v5235_v58 = vld [vmem:[#allocation79_spill] sm:$0xff] }
 0x264   : > { %2972 = vmatmul.mubr.f32.gmra.mxu1 %v2002_v2  ;;  %v1805_v9 = vmul.f32 %v3130_v4, %v5231_v12  ;;  %v1687_v40 = vadd.f32 1e-05, %v1623_v15  ;;  %v2005_v3 = vmax.f32 %v1941_v19, 0.0  ;;  %v1874_v45 = vmul.f32 %v4318_v21, %v1803_v52  ;;  %v5233_v2 = vld [vmem:[#allocation61_spill] sm:$0xff]  ;;  %v5238_v12 = vld [vmem:[#allocation56_spill] sm:$0xff] }
 0x265   : > { %3143 = vrsqrt.f32 %v1680_v61  ;;  %v1618_v41 = vmul.f32 0.015625, %v1554_v1  ;;  %v1871_v20 = vmul.f32 %v4318_v21, %v1800_v30  ;;  %2974 = vmatprep.mubr.f32.mxu1 %v2003_v57  ;;  %v2004_v62 = vmax.f32 %v1940_v55, 0.0  ;;  %v5234_v57 = vld [vmem:[#allocation54_spill] sm:$0xff]  ;;  %v5236_v30 = vld [vmem:[#allocation80_spill] sm:$0xff] }
 0x266   : > { %v3132_v11 = vpop.eup %3131  ;;  %3145 = vrsqrt.f32 %v1685_v59  ;;  %v1346_v26 = vpop.xlane.xlu1 %1345  ;;  %v2007_v14 = vmax.f32 %v1943_v33, 0.0  ;;  %v1499_v6 = vmul.f32 64.0, %v1435_v38  ;;  %v1876_v53 = vmul.f32 %v4318_v21, %v1805_v9 }
 0x267   : > { %v1682_v60 = vadd.f32 1e-05, %v1618_v41  ;;  %v1556_v0 = vsub.f32 %v1346_v26, %v4490_v8  ;;  %v1356_v47 = vpop.xlane.xlu0 %1355  ;;  %v1942_v43 = vadd.f32 %v4344_v29, %v1871_v20  ;;  %v1802_v36 = vmul.f32 %v3132_v11, %v5232_v63  ;;  %v3134_v44 = vpop.eup %3133  ;;  %v5237_v26 = vld [vmem:[#allocation63_spill] sm:$0xff] }
 0x268   : > { %v1561_v25 = vsub.f32 %v1356_v47, %v4531_v7  ;;  %2975 = vmatmul.mubr.f32.gmra.mxu1 %v2004_v62  ;;  %v1945_v50 = vadd.f32 %v4344_v29, %v1874_v45  ;;  %v1807_v35 = vmul.f32 %v3134_v44, %v5234_v57  ;;  %v1437_v15 = vmul.f32 %v5236_v30, %v5236_v30  ;;  %v5244_v30 = vld [vmem:[#allocation67_spill] sm:$0xff] }
 0x269   : > { %3147 = vrsqrt.f32 %v1682_v60  ;;  %v1620_v5 = vmul.f32 0.015625, %v1556_v0  ;;  %v2006_v42 = vmax.f32 %v1942_v43, 0.0  ;;  %v1873_v22 = vmul.f32 %v4318_v21, %v1802_v36  ;;  %2977 = vmatprep.mubr.f32.mxu1 %v2005_v3 }
 0x26a   : > { %v3136_v17 = vpop.eup %3135  ;;  %v1625_v8 = vmul.f32 0.015625, %v1561_v25  ;;  %v1350_v27 = vpop.xlane.xlu1 %1349  ;;  %3149 = vrsqrt.f32 %v1687_v40  ;;  %v1947_v52 = vadd.f32 %v4344_v29, %v1876_v53  ;;  %v2009_v11 = vmax.f32 %v1945_v50, 0.0 }
 0x26b   : > { %v1684_v34 = vadd.f32 1e-05, %v1620_v5  ;;  %v1558_v7 = vsub.f32 %v1350_v27, %v4501_v49  ;;  %v1944_v23 = vadd.f32 %v4344_v29, %v1873_v22  ;;  %v1804_v10 = vmul.f32 %v3136_v17, %v5233_v2  ;;  %v3138_v39 = vpop.eup %3137  ;;  %v5239_v22 = vld [vmem:[#allocation64_spill] sm:$0xff] }
 0x26c   : > { %v1689_v59 = vadd.f32 1e-05, %v1625_v8  ;;  %2978 = vmatmul.mubr.f32.gmra.mxu1 %v2006_v42  ;;  %v1438_v49 = vmul.f32 %v5235_v58, %v5235_v58  ;;  %v1878_v33 = vmul.f32 %v4318_v21, %v1807_v35  ;;  %v1809_v9 = vmul.f32 %v3138_v39, %v5238_v12  ;;  %v5243_v39 = vld [vmem:[#allocation62_spill] sm:$0xff] }
 0x26d   : > { %3151 = vrsqrt.f32 %v1684_v34  ;;  %v1622_v4 = vmul.f32 0.015625, %v1558_v7  ;;  %v2008_v61 = vmax.f32 %v1944_v23, 0.0  ;;  %v1875_v1 = vmul.f32 %v4318_v21, %v1804_v10  ;;  %2980 = vmatprep.mubr.f32.mxu1 %v2007_v14  ;;  %v5241_v34 = vld [vmem:[#allocation81_spill] sm:$0xff] }
 0x26e   : > { %v3140_v19 = vpop.eup %3139  ;;  %3153 = vrsqrt.f32 %v1689_v59  ;;  %v1354_v55 = vpop.xlane.xlu1 %1353  ;;  %v1501_v40 = vmul.f32 64.0, %v1437_v15  ;;  %v1502_v3 = vmul.f32 64.0, %v1438_v49  ;;  %v1949_v27 = vadd.f32 %v4344_v29, %v1878_v33 }
 0x26f   : > { %v1360_v31 = vpop.xlane.xlu0 %1359  ;;  %v1686_v54 = vadd.f32 1e-05, %v1622_v4  ;;  %v1560_v38 = vsub.f32 %v1354_v55, %v4529_v48  ;;  %v1946_v20 = vadd.f32 %v4344_v29, %v1875_v1  ;;  %v1806_v62 = vmul.f32 %v3140_v19, %v5237_v26  ;;  %v3142_v60 = vpop.eup %3141  ;;  %v4667_v55 = vld [vmem:[%s4970_s3] ss:$0 sm:$0xff] }
 0x270   : > { %v1563_v41 = vsub.f32 %v1360_v31, %v1499_v6  ;;  %2981 = vmatmul.mubr.f32.gmra.mxu1 %v2008_v61  ;;  %v2011_v48 = vmax.f32 %v1947_v52, 0.0  ;;  %v1880_v14 = vmul.f32 %v4318_v21, %v1809_v9  ;;  %v5240_v6 = vld [vmem:[#allocation59_spill] sm:$0xff]  ;;  %v1440_v7 = vmul.f32 %v5241_v34, %v5241_v34 }
 0x271   : > { %3155 = vrsqrt.f32 %v1686_v54  ;;  %v1624_v0 = vmul.f32 0.015625, %v1560_v38  ;;  %v2010_v43 = vmax.f32 %v1946_v20, 0.0  ;;  %2983 = vmatprep.mubr.f32.mxu1 %v2009_v11  ;;  %v1877_v25 = vmul.f32 %v4318_v21, %v1806_v62  ;;  %v5245_v20 = vld [vmem:[#allocation83_spill] sm:$0xff] }
 0x272   : > { %v1627_v47 = vmul.f32 0.015625, %v1563_v41  ;;  %v3144_v63 = vpop.eup %3143  ;;  %v1358_v36 = vpop.xlane.xlu1 %1357  ;;  %v1811_v53 = vmul.f32 %v3142_v60, %v5240_v6  ;;  %v2013_v49 = vmax.f32 %v1949_v27, 0.0  ;;  %v1442_v11 = vmul.f32 %v5245_v20, %v5245_v20  ;;  %v5251_v20 = vld [vmem:[#allocation75_spill] sm:$0xff] }
 0x273   : > { %v3146_v45 = vpop.eup %3145  ;;  %v1688_v44 = vadd.f32 1e-05, %v1624_v0  ;;  %v1562_v42 = vsub.f32 %v1358_v36, %v4533_v18  ;;  %v1808_v17 = vmul.f32 %v3144_v63, %v5239_v22  ;;  %v1948_v8 = vadd.f32 %v4344_v29, %v1877_v25  ;;  %v5242_v18 = vld [vmem:[#allocation82_spill] sm:$0xff] }
 0x274   : > { %v1691_v5 = vadd.f32 1e-05, %v1627_v47  ;;  %2984 = vmatmul.mubr.f32.gmra.mxu1 %v2010_v43  ;;  %v1439_v59 = vmul.f32 %v5242_v18, %v5242_v18  ;;  %v1813_v4 = vmul.f32 %v3146_v45, %v5243_v39  ;;  %v1882_v31 = vmul.f32 %v4667_v55, %v1811_v53  ;;  %v5246_v47 = vld [vmem:[#allocation68_spill] sm:$0xff]  ;;  %v4678_v36 = vld [vmem:[%s4971_s4] ss:$0 sm:$0xff]  ;;  %v5249_v18 = vld [vmem:[#allocation71_spill] sm:$0xff] }
 0x275   : > { %3157 = vrsqrt.f32 %v1688_v44  ;;  %v1626_v23 = vmul.f32 0.015625, %v1562_v42  ;;  %v1879_v2 = vmul.f32 %v4318_v21, %v1808_v17  ;;  %2986 = vmatprep.mubr.f32.mxu1 %v2011_v48  ;;  %v2012_v35 = vmax.f32 %v1948_v8, 0.0  ;;  %v5247_v25 = vld [vmem:[#allocation66_spill] sm:$0xff] }
 0x276   : > { %v3148_v10 = vpop.eup %3147  ;;  %3159 = vrsqrt.f32 %v1691_v5  ;;  %v1362_v50 = vpop.xlane.xlu1 %1361  ;;  %v1951_v21 = vadd.f32 %v4344_v29, %v1880_v14  ;;  %v1504_v26 = vmul.f32 64.0, %v1440_v7  ;;  %v1884_v33 = vmul.f32 %v4667_v55, %v1813_v4  ;;  %v5248_v14 = vld [vmem:[#allocation70_spill] sm:$0xff] }
 0x277   : > { %v1364_v57 = vpop.xlane.xlu0 %1363  ;;  %v1690_v61 = vadd.f32 1e-05, %v1626_v23  ;;  %v1564_v1 = vsub.f32 %v1362_v50, %v4560_v13  ;;  %v1950_v58 = vadd.f32 %v4344_v29, %v1879_v2  ;;  %v1810_v15 = vmul.f32 %v3148_v10, %v5244_v30  ;;  %v3150_v52 = vpop.eup %3149 }
 0x278   : > { %v1565_v19 = vsub.f32 %v1364_v57, %v1501_v40  ;;  %2987 = vmatmul.mubr.f32.gmra.mxu1 %v2012_v35  ;;  %v2015_v63 = vmax.f32 %v1951_v21, 0.0  ;;  %v1953_v40 = vadd.f32 %v4678_v36, %v1882_v31  ;;  %v1815_v45 = vmul.f32 %v3150_v52, %v5247_v25 }
 0x279   : > { %3161 = vrsqrt.f32 %v1690_v61  ;;  %v1628_v54 = vmul.f32 0.015625, %v1564_v1  ;;  %v2014_v13 = vmax.f32 %v1950_v58, 0.0  ;;  %2989 = vmatprep.mubr.f32.mxu1 %v2013_v49  ;;  %v1881_v62 = vmul.f32 %v4667_v55, %v1810_v15 }
 0x27a   : > { %v1629_v38 = vmul.f32 0.015625, %v1565_v19  ;;  %v3152_v41 = vpop.eup %3151  ;;  %v1366_v29 = vpop.xlane.xlu1 %1365  ;;  %v1503_v5 = vmul.f32 64.0, %v1439_v59  ;;  %v1955_v27 = vadd.f32 %v4678_v36, %v1884_v33  ;;  %v2017_v2 = vmax.f32 %v1953_v40, 0.0 }
 0x27b   : > { %v3154_v12 = vpop.eup %3153  ;;  %v1692_v9 = vadd.f32 1e-05, %v1628_v54  ;;  %v1566_v0 = vsub.f32 %v1366_v29, %v1502_v3  ;;  %v1812_v43 = vmul.f32 %v3152_v41, %v5246_v47  ;;  %v1952_v48 = vadd.f32 %v4678_v36, %v1881_v62  ;;  %v5250_v41 = vld [vmem:[#allocation72_spill] sm:$0xff]  ;;  %v5252_v29 = vld [vmem:[#allocation6_spill] sm:$0xff] }
 0x27c   : > { %v1693_v60 = vadd.f32 1e-05, %v1629_v38  ;;  %2990 = vmatmul.mubr.f32.gmra.mxu1 %v2014_v13  ;;  %v1817_v6 = vmul.f32 %v3154_v12, %v5248_v14  ;;  %v1506_v10 = vmul.f32 64.0, %v1442_v11  ;;  %v1886_v50 = vmul.f32 %v4667_v55, %v1815_v45 }
 0x27d   : > { %3163 = vrsqrt.f32 %v1692_v9  ;;  %v1630_v44 = vmul.f32 0.015625, %v1566_v0  ;;  %v1883_v3 = vmul.f32 %v4667_v55, %v1812_v43  ;;  %2992 = vmatprep.mubr.f32.mxu1 %v2015_v63  ;;  %v2016_v8 = vmax.f32 %v1952_v48, 0.0 }
 0x27e   : > { %v3156_v42 = vpop.eup %3155  ;;  %3165 = vrsqrt.f32 %v1693_v60  ;;  %v1370_v22 = vpop.xlane.xlu1 %1369  ;;  %v1445_v61 = vmul.f32 %v4239_v56, %v4239_v56  ;;  %v2019_v58 = vmax.f32 %v1955_v27, 0.0  ;;  %v1888_v21 = vmul.f32 %v4667_v55, %v1817_v6 }
 0x27f   : > { %v1368_v17 = vpop.xlane.xlu0 %1367  ;;  %v1694_v53 = vadd.f32 1e-05, %v1630_v44  ;;  %v1568_v34 = vsub.f32 %v1370_v22, %v1504_v26  ;;  %v1954_v23 = vadd.f32 %v4678_v36, %v1883_v3  ;;  %v1814_v59 = vmul.f32 %v3156_v42, %v5249_v18  ;;  %v5253_v44 = vld [vmem:[#allocation76_spill] sm:$0xff] }
 0x280   : > { %v1567_v7 = vsub.f32 %v1368_v17, %v1503_v5  ;;  %2993 = vmatmul.mubr.f32.gmra.mxu1 %v2016_v8  ;;  %v1957_v13 = vadd.f32 %v4678_v36, %v1886_v50  ;;  %v1444_v26 = vmul.f32 %v5252_v29, %v5252_v29  ;;  %v1959_v47 = vadd.f32 %v4678_v36, %v1888_v21 }
 0x281   : > { %3167 = vrsqrt.f32 %v1694_v53  ;;  %v1632_v57 = vmul.f32 0.015625, %v1568_v34  ;;  %v2018_v39 = vmax.f32 %v1954_v23, 0.0  ;;  %2995 = vmatprep.mubr.f32.mxu1 %v2017_v2  ;;  %v1885_v49 = vmul.f32 %v4667_v55, %v1814_v59  ;;  %v5254_v59 = vld [vmem:[#allocation78_spill] sm:$0xff] }
 0x282   : > { %v1631_v35 = vmul.f32 0.015625, %v1567_v7  ;;  %v3158_v4 = vpop.eup %3157  ;;  %v1374_v1 = vpop.xlane.xlu1 %1373  ;;  %v2021_v25 = vmax.f32 %v1957_v13, 0.0  ;;  %v1508_v17 = vmul.f32 64.0, %v1444_v26  ;;  %v2023_v6 = vmax.f32 %v1959_v47, 0.0 }
 0x283   : > { %v1260_v19 = vpop.xlane.xlu0 %1259  ;;  %v3160_v30 = vpop.eup %3159  ;;  %v1696_v15 = vadd.f32 1e-05, %v1632_v57  ;;  %v1570_v52 = vsub.f32 %v1374_v1, %v1506_v10  ;;  %v1956_v38 = vadd.f32 %v4678_v36, %v1885_v49  ;;  %v1816_v56 = vmul.f32 %v3158_v4, %v5250_v41  ;;  %v5255_v57 = vld [vmem:[#allocation10_spill] sm:$0xff]  ;;  %v5256_v41 = vld [vmem:[#allocation9_spill] sm:$0xff] }
 0x284   : > { %v1695_v31 = vadd.f32 1e-05, %v1631_v35  ;;  %v1513_v54 = vsub.f32 %v1260_v19, %v4291_v32  ;;  %v1819_v11 = vmul.f32 %v3160_v30, %v5251_v20  ;;  %2996 = vmatmul.mubr.f32.gmra.mxu1 %v2018_v39  ;;  %v1509_v1 = vmul.f32 64.0, %v1445_v61 }
 0x285   : > { %3169 = vrsqrt.f32 %v1696_v15  ;;  %v1634_v62 = vmul.f32 0.015625, %v1570_v52  ;;  %2998 = vmatprep.mubr.f32.mxu1 %v2019_v58  ;;  %v2020_v60 = vmax.f32 %v1956_v38, 0.0  ;;  %v1887_v0 = vmul.f32 %v4667_v55, %v1816_v56 }
 0x286   : > { %v1577_v33 = vmul.f32 0.015625, %v1513_v54  ;;  %v3162_v12 = vpop.eup %3161  ;;  %3171 = vrsqrt.f32 %v1695_v31  ;;  %v1372_v9 = vpop.xlane.xlu1 %1371  ;;  %v1890_v3 = vmul.f32 %v4667_v55, %v1819_v11  ;;  %v1446_v20 = vmul.f32 %v4251_v28, %v4251_v28 }
 0x287   : > { %v1262_v32 = vpop.xlane.xlu0 %1261  ;;  %v1698_v43 = vadd.f32 1e-05, %v1634_v62  ;;  %v1569_v48 = vsub.f32 %v1372_v9, %v4540_v37  ;;  %v1958_v45 = vadd.f32 %v4678_v36, %v1887_v0  ;;  %v1818_v5 = vmul.f32 %v3162_v12, %v5253_v44 }
 0x288   : > { %v1641_v63 = vadd.f32 1e-05, %v1577_v33  ;;  %v1514_v40 = vsub.f32 %v1262_v32, %v4285_v46  ;;  %2999 = vmatmul.mubr.f32.gmra.mxu1 %v2020_v60  ;;  %v1961_v18 = vadd.f32 %v4678_v36, %v1890_v3  ;;  %v5257_v60 = vld [vmem:[#allocation11_spill] sm:$0xff] }
 0x289   : > { %3173 = vrsqrt.f32 %v1698_v43  ;;  %v1633_v42 = vmul.f32 0.015625, %v1569_v48  ;;  %3001 = vmatprep.mubr.f32.mxu1 %v2021_v25  ;;  %v2022_v37 = vmax.f32 %v1958_v45, 0.0  ;;  %v1889_v46 = vmul.f32 %v4667_v55, %v1818_v5  ;;  %v5258_v43 = vld [vmem:[#allocation12_spill] sm:$0xff] }
 0x28a   : > { %v1578_v22 = vmul.f32 0.015625, %v1514_v40  ;;  %v3164_v8 = vpop.eup %3163  ;;  %3175 = vrsqrt.f32 %v1641_v63  ;;  %v1378_v27 = vpop.xlane.xlu1 %1377  ;;  %v2025_v38 = vmax.f32 %v1961_v18, 0.0  ;;  %v1510_v40 = vmul.f32 64.0, %v1446_v20 }
 0x28b   : > { %v1264_v14 = vpop.xlane.xlu0 %1263  ;;  %v3166_v53 = vpop.eup %3165  ;;  %v1697_v34 = vadd.f32 1e-05, %v1633_v42  ;;  %v1572_v23 = vsub.f32 %v1378_v27, %v1508_v17  ;;  %v1960_v10 = vadd.f32 %v4678_v36, %v1889_v46  ;;  %v1820_v50 = vmul.f32 %v3164_v8, %v5254_v59  ;;  %v5259_v27 = vld [vmem:[#allocation14_spill] sm:$0xff] }
 0x28c   : > { %v1642_v7 = vadd.f32 1e-05, %v1578_v22  ;;  %v1515_v2 = vsub.f32 %v1264_v14, %v4297_v51  ;;  %v1821_v35 = vmul.f32 %v3166_v53, %v5255_v57  ;;  %3002 = vmatmul.mubr.f32.gmra.mxu1 %v2022_v37 }
 0x28d   : > { %3177 = vrsqrt.f32 %v1697_v34  ;;  %v1636_v39 = vmul.f32 0.015625, %v1572_v23  ;;  %3004 = vmatprep.mubr.f32.mxu1 %v2023_v6  ;;  %v2024_v21 = vmax.f32 %v1960_v10, 0.0  ;;  %v1891_v51 = vmul.f32 %v4667_v55, %v1820_v50  ;;  %v5260_v6 = vld [vmem:[#allocation13_spill] sm:$0xff]  ;;  %v5261_v50 = vld [vmem:[#allocation16_spill] sm:$0xff] }
 0x28e   : > { %v1579_v4 = vmul.f32 0.015625, %v1515_v2  ;;  %v3168_v19 = vpop.eup %3167  ;;  %3179 = vrsqrt.f32 %v1642_v7  ;;  %v1376_v58 = vpop.xlane.xlu1 %1375  ;;  %v1892_v30 = vmul.f32 %v4667_v55, %v1821_v35 }
 0x28f   : > { %v1266_v49 = vpop.xlane.xlu0 %1265  ;;  %v1700_v15 = vadd.f32 1e-05, %v1636_v39  ;;  %v1571_v52 = vsub.f32 %v1376_v58, %v4610_v16  ;;  %v1962_v13 = vadd.f32 %v4678_v36, %v1891_v51  ;;  %v1822_v56 = vmul.f32 %v3168_v19, %v5256_v41  ;;  %v5262_v39 = vld [vmem:[#allocation2_spill] sm:$0xff] }
 0x290   : > { %v1643_v31 = vadd.f32 1e-05, %v1579_v4  ;;  %v1516_v54 = vsub.f32 %v1266_v49, %v4293_v24  ;;  %v1963_v61 = vadd.f32 %v4678_v36, %v1892_v30  ;;  %3005 = vmatmul.mubr.f32.gmra.mxu1 %v2024_v21 }
 0x291   : > { %3181 = vrsqrt.f32 %v1700_v15  ;;  %v1635_v11 = vmul.f32 0.015625, %v1571_v52  ;;  %3007 = vmatprep.mubr.f32.mxu1 %v2025_v38  ;;  %v2026_v62 = vmax.f32 %v1962_v13, 0.0  ;;  %v1893_v24 = vmul.f32 %v4667_v55, %v1822_v56  ;;  %v5263_v15 = vld [vmem:[#allocation5_spill] sm:$0xff] }
 0x292   : > { %v1580_v29 = vmul.f32 0.015625, %v1516_v54  ;;  %v3170_v26 = vpop.eup %3169  ;;  %3183 = vrsqrt.f32 %v1643_v31  ;;  %v1380_v16 = vpop.xlane.xlu1 %1379  ;;  %v2027_v47 = vmax.f32 %v1963_v61, 0.0  ;;  %v5264_v54 = vld [vmem:[#allocation18_spill] sm:$0xff] }
 0x293   : > { %v3172_v33 = vpop.eup %3171  ;;  %v1699_v12 = vadd.f32 1e-05, %v1635_v11  ;;  %v1573_v32 = vsub.f32 %v1380_v16, %v1509_v1  ;;  %v1824_v0 = vmul.f32 %v3170_v26, %v5257_v60  ;;  %v1964_v28 = vadd.f32 %v4678_v36, %v1893_v24  ;;  %v5265_v26 = vld [vmem:[#allocation4_spill] sm:$0xff]  ;;  %v5266_v24 = vld [vmem:[#allocation17_spill] sm:$0xff] }
 0x294   : > { %v1644_v9 = vadd.f32 1e-05, %v1580_v29  ;;  %v1823_v63 = vmul.f32 %v3172_v33, %v5258_v43  ;;  %3008 = vmatmul.mubr.f32.gmra.mxu1 %v2026_v62 }
 0x295   : > { %3185 = vrsqrt.f32 %v1699_v12  ;;  %v1637_v48 = vmul.f32 0.015625, %v1573_v32  ;;  %v1895_v25 = vmul.f32 %v4667_v55, %v1824_v0  ;;  %3010 = vmatprep.mubr.f32.mxu1 %v2027_v47  ;;  %v2028_v5 = vmax.f32 %v1964_v28, 0.0  ;;  %v5267_v28 = vld [vmem:[#allocation7_spill] sm:$0xff] }
 0x296   : > { %v3174_v45 = vpop.eup %3173  ;;  %3187 = vrsqrt.f32 %v1644_v9  ;;  %v1382_v44 = vpop.xlane.xlu1 %1381  ;;  %v1894_v3 = vmul.f32 %v4667_v55, %v1823_v63 }
 0x297   : > { %v3176_v42 = vpop.eup %3175  ;;  %v1701_v22 = vadd.f32 1e-05, %v1637_v48  ;;  %v1574_v17 = vsub.f32 %v1382_v44, %v1510_v40  ;;  %v1966_v8 = vadd.f32 %v4678_v36, %v1895_v25  ;;  %v1826_v14 = vmul.f32 %v3174_v45, %v5259_v27 }
 0x298   : > { %v1965_v37 = vadd.f32 %v4678_v36, %v1894_v3  ;;  %v1769_v46 = vmul.f32 %v3176_v42, %v5260_v6  ;;  %3011 = vmatmul.mubr.f32.gmra.mxu1 %v2028_v5  ;;  %v5268_v3 = vld [vmem:[#allocation8_spill] sm:$0xff] }
 0x299   : > { %3189 = vrsqrt.f32 %v1701_v22  ;;  %v1638_v53 = vmul.f32 0.015625, %v1574_v17  ;;  %v2030_v34 = vmax.f32 %v1966_v8, 0.0  ;;  %v1897_v10 = vmul.f32 %v4667_v55, %v1826_v14  ;;  %v4763_v14 = vld [vmem:[%s4973_s6] ss:$0 sm:$0xff] }
 0x29a   : > { %v3178_v7 = vpop.eup %3177  ;;  %v2029_v23 = vmax.f32 %v1965_v37, 0.0  ;;  %v1840_v2 = vmul.f32 %v4667_v55, %v1769_v46 }
 0x29b   : > { %v3180_v18 = vpop.eup %3179  ;;  %v1702_v59 = vadd.f32 1e-05, %v1638_v53  ;;  %v1825_v57 = vmul.f32 %v3178_v7, %v5261_v50  ;;  %v1968_v21 = vadd.f32 %v4678_v36, %v1897_v10 }
 0x29c   : > { %3013 = vmatprep.mubr.f32.mxu1 %v2029_v23  ;;  %v1911_v35 = vadd.f32 %v4678_v36, %v1840_v2  ;;  %v1770_v4 = vmul.f32 %v3180_v18, %v5262_v39 }
 0x29d   : > { %3191 = vrsqrt.f32 %v1702_v59  ;;  %3014 = vmatmul.mubr.f32.gmra.mxu1 %v2030_v34  ;;  %v1896_v1 = vmul.f32 %v4667_v55, %v1825_v57  ;;  %v2032_v56 = vmax.f32 %v1968_v21, 0.0 }
 0x29e   : > { %v3182_v19 = vpop.eup %3181  ;;  %v1975_v58 = vmax.f32 %v1911_v35, 0.0  ;;  %v1841_v49 = vmul.f32 %v4667_v55, %v1770_v4 }
 0x29f   : > { %v3184_v51 = vpop.eup %3183  ;;  %v1967_v30 = vadd.f32 %v4678_v36, %v1896_v1  ;;  %v1828_v31 = vmul.f32 %v3182_v19, %v5263_v15 }
 0x2a0   : > { %2932 = vmatprep.mubr.f32.mxu0 %v1975_v58  ;;  %v1912_v52 = vadd.f32 %v4678_v36, %v1841_v49  ;;  %v1771_v38 = vmul.f32 %v3184_v51, %v5264_v54 }
 0x2a1   : > { %v2031_v13 = vmax.f32 %v1967_v30, 0.0  ;;  %v1899_v11 = vmul.f32 %v4667_v55, %v1828_v31 }
 0x2a2   : > { %v3186_v61 = vpop.eup %3185  ;;  %v1976_v41 = vmax.f32 %v1912_v52, 0.0  ;;  %v1842_v20 = vmul.f32 %v4667_v55, %v1771_v38 }
 0x2a3   : > { %v3188_v29 = vpop.eup %3187  ;;  %3016 = vmatprep.mubr.f32.mxu1 %v2031_v13  ;;  %v1827_v16 = vmul.f32 %v3186_v61, %v5265_v26  ;;  %v1970_v0 = vadd.f32 %v4678_v36, %v1899_v11 }
 0x2a4   : > { %2933 = vmatmul.mubr.f32.gmra.mxu0 %v1976_v41  ;;  %3017 = vmatmul.mubr.f32.gmra.mxu1 %v2032_v56  ;;  %v1913_v62 = vadd.f32 %v4678_v36, %v1842_v20  ;;  %v1772_v33 = vmul.f32 %v3188_v29, %v5266_v24 }
 0x2a5   : > { %v1898_v12 = vmul.f32 %v4667_v55, %v1827_v16  ;;  %v2034_v44 = vmax.f32 %v1970_v0, 0.0 }
 0x2a6   : > { %v3190_v9 = vpop.eup %3189  ;;  %v1977_v32 = vmax.f32 %v1913_v62, 0.0  ;;  %v1843_v60 = vmul.f32 %v4667_v55, %v1772_v33 }
 0x2a7   : > { %v1969_v47 = vadd.f32 %v4678_v36, %v1898_v12  ;;  %v1829_v43 = vmul.f32 %v3190_v9, %v5267_v28 }
 0x2a8   : > { %2935 = vmatprep.mubr.f32.mxu0 %v1977_v32  ;;  %v1914_v63 = vadd.f32 %v4678_v36, %v1843_v60 }
 0x2a9   : > { %v2033_v48 = vmax.f32 %v1969_v47, 0.0  ;;  %v1900_v40 = vmul.f32 %v4667_v55, %v1829_v43 }
 0x2aa   : > { %v3192_v25 = vpop.eup %3191  ;;  %v1978_v45 = vmax.f32 %v1914_v63, 0.0 }
 0x2ab   : > { %3019 = vmatprep.mubr.f32.mxu1 %v2033_v48  ;;  %v1971_v5 = vadd.f32 %v4678_v36, %v1900_v40  ;;  %v1830_v42 = vmul.f32 %v3192_v25, %v5268_v3 }
 0x2ac   : > { %2936 = vmatmul.mubr.f32.gmra.mxu0 %v1978_v45  ;;  %3020 = vmatmul.mubr.f32.gmra.mxu1 %v2034_v44 }
 0x2ad   : > { %v2035_v22 = vmax.f32 %v1971_v5, 0.0  ;;  %v1901_v17 = vmul.f32 %v4667_v55, %v1830_v42 }
 0x2af   : > { %3022 = vmatprep.mubr.f32.mxu1 %v2035_v22  ;;  %v1972_v8 = vadd.f32 %v4678_v36, %v1901_v17 }
 0x2b1   : > { %v2036_v27 = vmax.f32 %v1972_v8, 0.0 }
 0x2b3   : > { %3023 = vmatmul.mubr.f32.gmra.mxu1 %v2036_v27 }
 0x2e0   : > { %v2940_v55 = vpop.f32.mrf.mxu1 }
 0x2e1   : > { %v2931_v36 = vpop.f32.mrf.mxu0  ;;  %v2162_v37 = vadd.f32 %v2940_v55, %v4763_v14 }
 0x2e2   : > { %v2132_v6 = vadd.f32 %v2931_v36, %v4763_v14  ;;  %v2156_v46 = vpop.f32.mrf.mxu1 }
 0x2e3   : > { %2453 = vst.msk [vmem:[%s4770_s22 + $0x38] sm:$0xff] %vm2445_vm1, %v2162_v37  ;;  %v2126_v53 = vpop.f32.mrf.mxu0  ;;  %v2157_v34 = vadd.f32 %v4763_v14, %v2156_v46 }
 0x2e4   : > { %2447 = vst.msk [vmem:[%s4770_s22 + $0x8] sm:$0xff] %vm2445_vm1, %v2132_v6  ;;  %v2127_v7 = vadd.f32 %v4763_v14, %v2126_v53 }
 0x2e5   : > { %2452 = vst.msk [vmem:[%s4770_s22 + $0x30] sm:$0xff] %vm2445_vm1, %v2157_v34 }
 0x2e6   : > { %2446 = vst.msk [vmem:[%s4770_s22] sm:$0xff] %vm2445_vm1, %v2127_v7 }
 0x2e8   : > { %v2943_v23 = vpop.f32.mrf.mxu1 }
 0x2e9   : > { %v2172_v2 = vadd.f32 %v2943_v23, %v4763_v14 }
 0x2ea   : > { %v2166_v10 = vpop.f32.mrf.mxu1 }
 0x2eb   : > { %2455 = vst.msk [vmem:[%s4770_s22 + $0x48] sm:$0xff] %vm2445_vm1, %v2172_v2  ;;  %v2167_v18 = vadd.f32 %v4763_v14, %v2166_v10 }
 0x2ed   : > { %2454 = vst.msk [vmem:[%s4770_s22 + $0x40] sm:$0xff] %vm2445_vm1, %v2167_v18 }
 0x2f0   : > { %v2946_v59 = vpop.f32.mrf.mxu1 }
 0x2f1   : > { %v2182_v50 = vadd.f32 %v2946_v59, %v4763_v14 }
 0x2f2   : > { %v2176_v57 = vpop.f32.mrf.mxu1 }
 0x2f3   : > { %2457 = vst.msk [vmem:[%s4770_s22 + $0x58] sm:$0xff] %vm2445_vm1, %v2182_v50  ;;  %v2177_v35 = vadd.f32 %v4763_v14, %v2176_v57 }
 0x2f5   : > { %2456 = vst.msk [vmem:[%s4770_s22 + $0x50] sm:$0xff] %vm2445_vm1, %v2177_v35 }
 0x2f8   : > { %v2949_v39 = vpop.f32.mrf.mxu1 }
 0x2f9   : > { %v2192_v4 = vadd.f32 %v2949_v39, %v4763_v14 }
 0x2fa   : > { %v2186_v1 = vpop.f32.mrf.mxu1 }
 0x2fb   : > { %2459 = vst.msk [vmem:[%s4770_s22 + $0x68] sm:$0xff] %vm2445_vm1, %v2192_v4  ;;  %v2187_v19 = vadd.f32 %v4763_v14, %v2186_v1 }
 0x2fd   : > { %2458 = vst.msk [vmem:[%s4770_s22 + $0x60] sm:$0xff] %vm2445_vm1, %v2187_v19 }
 0x300   : > { %v2952_v58 = vpop.f32.mrf.mxu1 }
 0x301   : > { %v2202_v49 = vadd.f32 %v2952_v58, %v4763_v14 }
 0x302   : > { %v2196_v21 = vpop.f32.mrf.mxu1 }
 0x303   : > { %2461 = vst.msk [vmem:[%s4770_s22 + $0x78] sm:$0xff] %vm2445_vm1, %v2202_v49  ;;  %v2197_v51 = vadd.f32 %v4763_v14, %v2196_v21 }
 0x305   : > { %2460 = vst.msk [vmem:[%s4770_s22 + $0x70] sm:$0xff] %vm2445_vm1, %v2197_v51 }
 0x308   : > { %v2955_v30 = vpop.f32.mrf.mxu1 }
 0x309   : > { %v2212_v15 = vadd.f32 %v2955_v30, %v4763_v14 }
 0x30a   : > { %v2206_v31 = vpop.f32.mrf.mxu1 }
 0x30b   : > { %2463 = vst.msk [vmem:[%s4770_s22 + $0x88] sm:$0xff] %vm2445_vm1, %v2212_v15  ;;  %v2207_v52 = vadd.f32 %v4763_v14, %v2206_v31 }
 0x30d   : > { %2462 = vst.msk [vmem:[%s4770_s22 + $0x80] sm:$0xff] %vm2445_vm1, %v2207_v52 }
 0x310   : > { %v2958_v54 = vpop.f32.mrf.mxu1 }
 0x311   : > { %v2222_v38 = vadd.f32 %v2958_v54, %v4763_v14 }
 0x312   : > { %v2216_v13 = vpop.f32.mrf.mxu1 }
 0x313   : > { %2465 = vst.msk [vmem:[%s4770_s22 + $0x98] sm:$0xff] %vm2445_vm1, %v2222_v38  ;;  %v2217_v61 = vadd.f32 %v4763_v14, %v2216_v13 }
 0x314   : > { %v2961_v41 = vpop.f32.mrf.mxu1 }
 0x315   : > { %2464 = vst.msk [vmem:[%s4770_s22 + $0x90] sm:$0xff] %vm2445_vm1, %v2217_v61  ;;  %v2232_v56 = vadd.f32 %v2961_v41, %v4763_v14 }
 0x316   : > { %v2226_v20 = vpop.f32.mrf.mxu1 }
 0x317   : > { %2467 = vst.msk [vmem:[%s4770_s22 + $0xa8] sm:$0xff] %vm2445_vm1, %v2232_v56  ;;  %v2227_v11 = vadd.f32 %v4763_v14, %v2226_v20 }
 0x318   : > { %v2964_v29 = vpop.f32.mrf.mxu1 }
 0x319   : > { %2466 = vst.msk [vmem:[%s4770_s22 + $0xa0] sm:$0xff] %vm2445_vm1, %v2227_v11  ;;  %v2242_v26 = vadd.f32 %v2964_v29, %v4763_v14 }
 0x31a   : > { %v2236_v16 = vpop.f32.mrf.mxu1 }
 0x31b   : > { %2469 = vst.msk [vmem:[%s4770_s22 + $0xb8] sm:$0xff] %vm2445_vm1, %v2242_v26  ;;  %v2237_v62 = vadd.f32 %v4763_v14, %v2236_v16 }
 0x31c   : > { %v2967_v24 = vpop.f32.mrf.mxu1 }
 0x31d   : > { %2468 = vst.msk [vmem:[%s4770_s22 + $0xb0] sm:$0xff] %vm2445_vm1, %v2237_v62  ;;  %v2252_v33 = vadd.f32 %v2967_v24, %v4763_v14 }
 0x31e   : > { %v2246_v12 = vpop.f32.mrf.mxu1 }
 0x31f   : > { %2471 = vst.msk [vmem:[%s4770_s22 + $0xc8] sm:$0xff] %vm2445_vm1, %v2252_v33  ;;  %v2247_v9 = vadd.f32 %v4763_v14, %v2246_v12 }
 0x320   : > { %v2970_v32 = vpop.f32.mrf.mxu1 }
 0x321   : > { %2470 = vst.msk [vmem:[%s4770_s22 + $0xc0] sm:$0xff] %vm2445_vm1, %v2247_v9  ;;  %v2262_v60 = vadd.f32 %v2970_v32, %v4763_v14 }
 0x322   : > { %v2256_v0 = vpop.f32.mrf.mxu1 }
 0x323   : > { %2473 = vst.msk [vmem:[%s4770_s22 + $0xd8] sm:$0xff] %vm2445_vm1, %v2262_v60  ;;  %v2257_v47 = vadd.f32 %v4763_v14, %v2256_v0 }
 0x324   : > { %v2973_v28 = vpop.f32.mrf.mxu1 }
 0x325   : > { %2472 = vst.msk [vmem:[%s4770_s22 + $0xd0] sm:$0xff] %vm2445_vm1, %v2257_v47  ;;  %v2272_v43 = vadd.f32 %v2973_v28, %v4763_v14 }
 0x326   : > { %v2266_v63 = vpop.f32.mrf.mxu1 }
 0x327   : > { %2475 = vst.msk [vmem:[%s4770_s22 + $0xe8] sm:$0xff] %vm2445_vm1, %v2272_v43  ;;  %v2267_v48 = vadd.f32 %v4763_v14, %v2266_v63 }
 0x328   : > { %v2976_v40 = vpop.f32.mrf.mxu1 }
 0x329   : > { %2474 = vst.msk [vmem:[%s4770_s22 + $0xe0] sm:$0xff] %vm2445_vm1, %v2267_v48  ;;  %v2282_v25 = vadd.f32 %v2976_v40, %v4763_v14 }
 0x32a   : > { %v2276_v45 = vpop.f32.mrf.mxu1 }
 0x32b   : > { %2477 = vst.msk [vmem:[%s4770_s22 + $0xf8] sm:$0xff] %vm2445_vm1, %v2282_v25  ;;  %v2277_v44 = vadd.f32 %v4763_v14, %v2276_v45 }
 0x32c   : > { %v2979_v5 = vpop.f32.mrf.mxu1 }
 0x32d   : > { %2476 = vst.msk [vmem:[%s4770_s22 + $0xf0] sm:$0xff] %vm2445_vm1, %v2277_v44  ;;  %v2292_v3 = vadd.f32 %v2979_v5, %v4763_v14 }
 0x32e   : > { %v2286_v42 = vpop.f32.mrf.mxu1 }
 0x32f   : > { %2479 = vst.msk [vmem:[%s4770_s22 + $0x108] sm:$0xff] %vm2445_vm1, %v2292_v3  ;;  %v2287_v22 = vadd.f32 %v4763_v14, %v2286_v42 }
 0x330   : > { %v2982_v17 = vpop.f32.mrf.mxu1 }
 0x331   : > { %2478 = vst.msk [vmem:[%s4770_s22 + $0x100] sm:$0xff] %vm2445_vm1, %v2287_v22  ;;  %v2302_v8 = vadd.f32 %v2982_v17, %v4763_v14 }
 0x332   : > { %v2296_v27 = vpop.f32.mrf.mxu1 }
 0x333   : > { %2481 = vst.msk [vmem:[%s4770_s22 + $0x118] sm:$0xff] %vm2445_vm1, %v2302_v8  ;;  %v2297_v55 = vadd.f32 %v4763_v14, %v2296_v27 }
 0x334   : > { %v2985_v36 = vpop.f32.mrf.mxu1 }
 0x335   : > { %2480 = vst.msk [vmem:[%s4770_s22 + $0x110] sm:$0xff] %vm2445_vm1, %v2297_v55  ;;  %v2312_v37 = vadd.f32 %v2985_v36, %v4763_v14 }
 0x336   : > { %v2306_v6 = vpop.f32.mrf.mxu1 }
 0x337   : > { %2483 = vst.msk [vmem:[%s4770_s22 + $0x128] sm:$0xff] %vm2445_vm1, %v2312_v37  ;;  %v2307_v46 = vadd.f32 %v4763_v14, %v2306_v6 }
 0x338   : > { %v2988_v53 = vpop.f32.mrf.mxu1 }
 0x339   : > { %2482 = vst.msk [vmem:[%s4770_s22 + $0x120] sm:$0xff] %vm2445_vm1, %v2307_v46  ;;  %v2322_v34 = vadd.f32 %v2988_v53, %v4763_v14 }
 0x33a   : > { %v2316_v7 = vpop.f32.mrf.mxu1 }
 0x33b   : > { %2485 = vst.msk [vmem:[%s4770_s22 + $0x138] sm:$0xff] %vm2445_vm1, %v2322_v34  ;;  %v2317_v23 = vadd.f32 %v4763_v14, %v2316_v7 }
 0x33c   : > { %v2991_v2 = vpop.f32.mrf.mxu1 }
 0x33d   : > { %2484 = vst.msk [vmem:[%s4770_s22 + $0x130] sm:$0xff] %vm2445_vm1, %v2317_v23  ;;  %v2332_v10 = vadd.f32 %v2991_v2, %v4763_v14 }
 0x33e   : > { %v2326_v18 = vpop.f32.mrf.mxu1 }
 0x33f   : > { %2487 = vst.msk [vmem:[%s4770_s22 + $0x148] sm:$0xff] %vm2445_vm1, %v2332_v10  ;;  %v2327_v59 = vadd.f32 %v4763_v14, %v2326_v18 }
 0x340   : > { %v2994_v50 = vpop.f32.mrf.mxu1 }
 0x341   : > { %2486 = vst.msk [vmem:[%s4770_s22 + $0x140] sm:$0xff] %vm2445_vm1, %v2327_v59  ;;  %v2342_v57 = vadd.f32 %v2994_v50, %v4763_v14 }
 0x342   : > { %v2336_v35 = vpop.f32.mrf.mxu1 }
 0x343   : > { %2489 = vst.msk [vmem:[%s4770_s22 + $0x158] sm:$0xff] %vm2445_vm1, %v2342_v57  ;;  %v2337_v39 = vadd.f32 %v4763_v14, %v2336_v35 }
 0x344   : > { %v2997_v4 = vpop.f32.mrf.mxu1 }
 0x345   : > { %2488 = vst.msk [vmem:[%s4770_s22 + $0x150] sm:$0xff] %vm2445_vm1, %v2337_v39  ;;  %v2352_v1 = vadd.f32 %v2997_v4, %v4763_v14 }
 0x346   : > { %v2346_v19 = vpop.f32.mrf.mxu1 }
 0x347   : > { %2491 = vst.msk [vmem:[%s4770_s22 + $0x168] sm:$0xff] %vm2445_vm1, %v2352_v1  ;;  %v2347_v58 = vadd.f32 %v4763_v14, %v2346_v19 }
 0x348   : > { %v3000_v49 = vpop.f32.mrf.mxu1 }
 0x349   : > { %2490 = vst.msk [vmem:[%s4770_s22 + $0x160] sm:$0xff] %vm2445_vm1, %v2347_v58  ;;  %v2362_v21 = vadd.f32 %v3000_v49, %v4763_v14 }
 0x34a   : > { %v2356_v51 = vpop.f32.mrf.mxu1 }
 0x34b   : > { %2493 = vst.msk [vmem:[%s4770_s22 + $0x178] sm:$0xff] %vm2445_vm1, %v2362_v21  ;;  %v2357_v30 = vadd.f32 %v4763_v14, %v2356_v51 }
 0x34c   : > { %v3003_v15 = vpop.f32.mrf.mxu1 }
 0x34d   : > { %2492 = vst.msk [vmem:[%s4770_s22 + $0x170] sm:$0xff] %vm2445_vm1, %v2357_v30  ;;  %v2372_v31 = vadd.f32 %v3003_v15, %v4763_v14 }
 0x34e   : > { %v2366_v52 = vpop.f32.mrf.mxu1 }
 0x34f   : > { %2495 = vst.msk [vmem:[%s4770_s22 + $0x188] sm:$0xff] %vm2445_vm1, %v2372_v31  ;;  %v2367_v54 = vadd.f32 %v4763_v14, %v2366_v52 }
 0x350   : > { %v3006_v38 = vpop.f32.mrf.mxu1 }
 0x351   : > { %2494 = vst.msk [vmem:[%s4770_s22 + $0x180] sm:$0xff] %vm2445_vm1, %v2367_v54  ;;  %v2382_v13 = vadd.f32 %v3006_v38, %v4763_v14 }
 0x352   : > { %v2376_v61 = vpop.f32.mrf.mxu1 }
 0x353   : > { %2497 = vst.msk [vmem:[%s4770_s22 + $0x198] sm:$0xff] %vm2445_vm1, %v2382_v13  ;;  %v2377_v41 = vadd.f32 %v4763_v14, %v2376_v61 }
 0x354   : > { %v3009_v56 = vpop.f32.mrf.mxu1 }
 0x355   : > { %2496 = vst.msk [vmem:[%s4770_s22 + $0x190] sm:$0xff] %vm2445_vm1, %v2377_v41  ;;  %v2392_v20 = vadd.f32 %v3009_v56, %v4763_v14 }
 0x356   : > { %v2386_v11 = vpop.f32.mrf.mxu1 }
 0x357   : > { %2499 = vst.msk [vmem:[%s4770_s22 + $0x1a8] sm:$0xff] %vm2445_vm1, %v2392_v20  ;;  %v2387_v29 = vadd.f32 %v4763_v14, %v2386_v11 }
 0x358   : > { %v3012_v26 = vpop.f32.mrf.mxu1 }
 0x359   : > { %2498 = vst.msk [vmem:[%s4770_s22 + $0x1a0] sm:$0xff] %vm2445_vm1, %v2387_v29  ;;  %v2402_v16 = vadd.f32 %v3012_v26, %v4763_v14 }
 0x35a   : > { %v2396_v62 = vpop.f32.mrf.mxu1 }
 0x35b   : > { %2501 = vst.msk [vmem:[%s4770_s22 + $0x1b8] sm:$0xff] %vm2445_vm1, %v2402_v16  ;;  %v2397_v24 = vadd.f32 %v4763_v14, %v2396_v62 }
 0x35d   : > { %v3015_v33 = vpop.f32.mrf.mxu1  ;;  %2500 = vst.msk [vmem:[%s4770_s22 + $0x1b0] sm:$0xff] %vm2445_vm1, %v2397_v24 }
 0x35e   : > { %v2412_v12 = vadd.f32 %v3015_v33, %v4763_v14 }
 0x35f   : > { %v2406_v9 = vpop.f32.mrf.mxu1 }
 0x360   : > { %2503 = vst.msk [vmem:[%s4770_s22 + $0x1c8] sm:$0xff] %vm2445_vm1, %v2412_v12  ;;  %v2407_v32 = vadd.f32 %v4763_v14, %v2406_v9 }
 0x362   : > { %2502 = vst.msk [vmem:[%s4770_s22 + $0x1c0] sm:$0xff] %vm2445_vm1, %v2407_v32 }
 0x364   : > { %v2934_v60 = vpop.f32.mrf.mxu0  ;;  %v3018_v0 = vpop.f32.mrf.mxu1 }
 0x365   : > { %v2142_v47 = vadd.f32 %v2934_v60, %v4763_v14  ;;  %v2422_v28 = vadd.f32 %v3018_v0, %v4763_v14 }
 0x366   : > { %v2136_v43 = vpop.f32.mrf.mxu0  ;;  %v2416_v63 = vpop.f32.mrf.mxu1 }
 0x367   : > { %2449 = vst.msk [vmem:[%s4770_s22 + $0x18] sm:$0xff] %vm2445_vm1, %v2142_v47  ;;  %2505 = vst.msk [vmem:[%s4770_s22 + $0x1d8] sm:$0xff] %vm2445_vm1, %v2422_v28  ;;  %v2137_v48 = vadd.f32 %v4763_v14, %v2136_v43  ;;  %v2417_v40 = vadd.f32 %v4763_v14, %v2416_v63 }
 0x369   : > { %2448 = vst.msk [vmem:[%s4770_s22 + $0x10] sm:$0xff] %vm2445_vm1, %v2137_v48  ;;  %2504 = vst.msk [vmem:[%s4770_s22 + $0x1d0] sm:$0xff] %vm2445_vm1, %v2417_v40 }
 0x36c   : > { %v2937_v25 = vpop.f32.mrf.mxu0  ;;  %v3021_v45 = vpop.f32.mrf.mxu1 }
 0x36d   : > { %v2152_v44 = vadd.f32 %v2937_v25, %v4763_v14  ;;  %v2432_v5 = vadd.f32 %v3021_v45, %v4763_v14 }
 0x36e   : > { %v2146_v3 = vpop.f32.mrf.mxu0  ;;  %v2426_v42 = vpop.f32.mrf.mxu1 }
 0x36f   : > { %2451 = vst.msk [vmem:[%s4770_s22 + $0x28] sm:$0xff] %vm2445_vm1, %v2152_v44  ;;  %2507 = vst.msk [vmem:[%s4770_s22 + $0x1e8] sm:$0xff] %vm2445_vm1, %v2432_v5  ;;  %v2147_v22 = vadd.f32 %v4763_v14, %v2146_v3  ;;  %v2427_v17 = vadd.f32 %v4763_v14, %v2426_v42 }
 0x371   : > { %2450 = vst.msk [vmem:[%s4770_s22 + $0x20] sm:$0xff] %vm2445_vm1, %v2147_v22  ;;  %2506 = vst.msk [vmem:[%s4770_s22 + $0x1e0] sm:$0xff] %vm2445_vm1, %v2427_v17 }
 0x373   : > { %v3024_v8 = vpop.f32.mrf.mxu1 }
 0x374   : > { %v2442_v27 = vadd.f32 %v3024_v8, %v4763_v14 }
 0x375   : > { %v2436_v55 = vpop.f32.mrf.mxu1 }
 0x376   : > { %2509 = vst.msk [vmem:[%s4770_s22 + $0x1f8] sm:$0xff] %vm2445_vm1, %v2442_v27  ;;  %v2437_v36 = vadd.f32 %v4763_v14, %v2436_v55 }
 0x378   : > { %2508 = vst.msk [vmem:[%s4770_s22 + $0x1f0] sm:$0xff] %vm2445_vm1, %v2437_v36 }
 0x379 PF: > { %s17_s24 = sadd.s32 1, %s3201_s24  }
 0x37a   : > { %p14_p4 = scmp.ge.s32.totalorder %s17_s24, 4  }
 0x37c   :  { %16 = sbr.rel (!%p14_p4) target bundleno = 1 (0x1), region = 78 }

</bundles_post_ra>
